<compile_context>
chip_gen: v5e
topology: v5e:2x2
jax: 0.10.0
libtpu: 0.0.40
codegen_flags: <defaults>
</compile_context>

<pallas_src>
import functools

import jax
import jax.numpy as jnp
from jax import lax
from jax.experimental import pallas as pl
from jax.experimental.pallas import tpu as pltpu


def _round_up(x, m):
    return ((x + m - 1) // m) * m


def _cdiv(a, b):
    return (a + b - 1) // b


def _conv_ln_gelu_kernel(x_ref, xh_ref, w_ref, b_ref, g_ref, bt_ref, o_ref,
                         win_ref, *, KQ, tl, c_out, eps):
    """One (batch, L-tile) grid step.

    x_ref  : (1, TL, SC)          stride-folded input rows for this tile
    xh_ref : (1, 8,  SC)          halo rows just past the tile boundary
    w_ref  : (KQ, SC, C_out_pad)  packed conv weights (VMEM resident)
    b_ref / g_ref / bt_ref : (1, C_out_pad) f32 (VMEM resident)
    o_ref  : (1, C_out_pad, TL)   output tile, already in NCL layout
    win_ref: (TL + 8, SC)         staging window (only used when KQ >= 2)
    """
    if KQ == 1:
        # No halo needed: the single tap reads the input block directly.
        acc = jnp.dot(x_ref[0], w_ref[0],
                      preferred_element_type=jnp.float32) + b_ref[...]
    else:
        # Tile + halo laid out contiguously so tap q is a unit-stride read at
        # sublane offset q.  Both stores are 8-row aligned.
        win_ref[pl.ds(0, tl), :] = x_ref[0]
        win_ref[pl.ds(tl, 8), :] = xh_ref[0]
        acc = jnp.dot(win_ref[pl.ds(0, tl), :], w_ref[0],
                      preferred_element_type=jnp.float32) + b_ref[...]
        for q in range(1, KQ):
            acc = acc + jnp.dot(win_ref[pl.ds(q, tl), :], w_ref[q],
                                preferred_element_type=jnp.float32)

    # One-pass LayerNorm statistics over the true channel count.  Padded
    # output lanes are exactly zero (zero weight columns + zero bias/gamma/
    # beta), so they do not perturb the sums; divide by the true C_out.
    inv_n = 1.0 / c_out
    s1 = jnp.sum(acc, axis=-1, keepdims=True)
    s2 = jnp.sum(acc * acc, axis=-1, keepdims=True)
    mean = s1 * inv_n
    var = jnp.maximum(s2 * inv_n - mean * mean, 0.0)
    y = (acc - mean) * lax.rsqrt(var + eps)
    y = y * g_ref[...] + bt_ref[...]

    # Exact (erf) GELU, matching torch.nn.GELU default.
    out = 0.5 * y * (1.0 + lax.erf(y * 0.7071067811865475))

    # Fused NLC -> NCL transpose (XLU); lane-dense store along L.
    o_ref[0] = jnp.transpose(out).astype(o_ref.dtype)


def wav2vec2_layernorm_conv_layer(x, weight, bias, ln_gamma, ln_beta, *,
                                  stride, eps=1e-5, tile_l=512,
                                  matmul_dtype=jnp.bfloat16, out_dtype=None):
    """x: (B, C_in, L); weight: (C_out, C_in, K); returns (B, C_out, L_out)."""
    B, C_in, L = x.shape
    C_out, _, K = weight.shape
    assert L >= K, "input shorter than the conv kernel"
    L_out = (L - K) // stride + 1
    out_dtype = x.dtype if out_dtype is None else out_dtype

    KQ = _cdiv(K, stride)              # stride-folded tap groups
    assert KQ - 1 <= 8, "halo window fixed at 8 stride-folded rows"
    SC = stride * C_in                 # stride-folded lane width
    C_out_pad = _round_up(C_out, 128)  # lane-dense output channels

    # Output-position tile: a multiple of 128 keeps both the (TL, SC) input
    # block and the transposed (C_out_pad, TL) output block (8,128)-legal and
    # the halo block index (l+1)*(TL//8) integral.
    TL = _round_up(min(tile_l, max(L_out, 1)), 128)
    # v7x megacore: keep a few tiles in the parallel grid so both TensorCores
    # get work (only fires for small workloads; harmless on v5e/v6e).
    while TL > 128 and B * _cdiv(L_out, TL) < 4:
        TL -= 128
    num_l = _cdiv(L_out, TL)

    # Stride-folded input (B, L2_pad, SC), padded so every tile's main block
    # and the last tile's halo block are in bounds.
    L2_pad = max(num_l * TL + 8, _cdiv(L, stride))
    L_pad = L2_pad * stride
    x_nlc = jnp.transpose(x, (0, 2, 1))
    x_nlc = jnp.pad(x_nlc, ((0, 0), (0, L_pad - L), (0, 0))).astype(matmul_dtype)
    x2 = x_nlc.reshape(B, L2_pad, SC)

    # Packed weights (KQ, SC, C_out_pad): tap (q, r) holds w[:, :, q*stride+r]
    # (zero when q*stride+r >= K), so x2[l+q] @ w2[q] sums exactly the conv
    # taps for output position l.  Padded output columns are zero.
    w_t = jnp.transpose(weight, (2, 1, 0))                       # (K, C_in, C_out)
    w_t = jnp.pad(w_t, ((0, KQ * stride - K), (0, 0), (0, C_out_pad - C_out)))
    w2 = w_t.reshape(KQ, SC, C_out_pad).astype(matmul_dtype)
    b_row = jnp.pad(bias, (0, C_out_pad - C_out)).reshape(1, C_out_pad).astype(jnp.float32)
    g_row = jnp.pad(ln_gamma, (0, C_out_pad - C_out)).reshape(1, C_out_pad).astype(jnp.float32)
    bt_row = jnp.pad(ln_beta, (0, C_out_pad - C_out)).reshape(1, C_out_pad).astype(jnp.float32)

    kernel = functools.partial(_conv_ln_gelu_kernel, KQ=KQ, tl=TL,
                               c_out=C_out, eps=eps)

    # Explicit VMEM budget: double-buffered blocks + staging window + a few
    # f32 intermediates, with 1.5x slack (v5e default scoped limit is 16 MiB).
    msz = jnp.dtype(matmul_dtype).itemsize
    osz = jnp.dtype(out_dtype).itemsize
    est = (2 * TL * SC * msz                   # input blocks (double buffered)
           + 2 * 8 * SC * msz                  # halo blocks
           + 2 * KQ * SC * C_out_pad * msz     # weights
           + 6 * C_out_pad * 4                 # bias / gamma / beta
           + 2 * C_out_pad * TL * osz          # output blocks
           + (TL + 8) * SC * msz               # staging window
           + 6 * TL * C_out_pad * 4)           # f32 intermediates (acc/LN/GELU)
    vmem_limit = int(min(max(32 << 20, int(est * 1.5) + (4 << 20)), 128 << 20))

    out = pl.pallas_call(
        kernel,
        out_shape=jax.ShapeDtypeStruct((B, C_out_pad, num_l * TL), out_dtype),
        grid_spec=pltpu.PrefetchScalarGridSpec(
            num_scalar_prefetch=0,
            grid=(B, num_l),
            in_specs=[
                # Stride-folded input rows for this output tile.
                pl.BlockSpec((1, TL, SC), lambda b, l: (b, l, 0)),
                # 8-row halo just past the tile boundary (same array).
                pl.BlockSpec((1, 8, SC), lambda b, l: (b, (l + 1) * (TL // 8), 0)),
                # VMEM-resident parameters (constant block index).
                # TODO(synk): pipeline_mode=pl.Buffered(1) would shave the
                # second weight buffer on v7x; left at default for safety.
                pl.BlockSpec((KQ, SC, C_out_pad), lambda b, l: (0, 0, 0)),
                pl.BlockSpec((1, C_out_pad), lambda b, l: (0, 0)),
                pl.BlockSpec((1, C_out_pad), lambda b, l: (0, 0)),
                pl.BlockSpec((1, C_out_pad), lambda b, l: (0, 0)),
            ],
            # Output produced directly in (B, C_out, L) layout, lane-dense L.
            out_specs=pl.BlockSpec((1, C_out_pad, TL), lambda b, l: (b, 0, l)),
            scratch_shapes=[pltpu.VMEM((TL + 8, SC), matmul_dtype)],
        ),
        compiler_params=pltpu.CompilerParams(
            dimension_semantics=("parallel", "parallel"),
            vmem_limit_bytes=vmem_limit),
    )(x2, x2, w2, b_row, g_row, bt_row)

    # Strip channel / position padding — already NCL, no XLA transpose needed.
    return out[:, :C_out, :L_out]


def _reference(x, weight, bias, ln_gamma, ln_beta, *, stride, eps=1e-5):
    # Pure-JAX reference matching the PyTorch module.
    y = lax.conv_general_dilated(
        x, weight, window_strides=(stride,), padding="VALID",
        dimension_numbers=("NCH", "OIH", "NCH"))
    y = y + bias[None, :, None]
    yt = jnp.transpose(y, (0, 2, 1))
    mean = jnp.mean(yt, axis=-1, keepdims=True)
    var = jnp.mean((yt - mean) ** 2, axis=-1, keepdims=True)
    yt = (yt - mean) / jnp.sqrt(var + eps) * ln_gamma + ln_beta
    y = jnp.transpose(yt, (0, 2, 1))
    return 0.5 * y * (1.0 + lax.erf(y / jnp.sqrt(2.0)))


if __name__ == "__main__":
    # Synthetic Wav2Vec2 config (intermediate layer): conv_dim -> (4, 32),
    # kernel=3, stride=2, conv_bias=True, feat_extract_activation="gelu".
    B, C_in, L = 2, 4, 16
    C_out, K, stride = 32, 3, 2

    key = jax.random.PRNGKey(0)
    kx, kw, kb, kg, kbe = jax.random.split(key, 5)
    x = jax.random.normal(kx, (B, C_in, L), dtype=jnp.float32)
    weight = jax.random.normal(kw, (C_out, C_in, K), dtype=jnp.float32) * 0.1
    bias = jax.random.normal(kb, (C_out,), dtype=jnp.float32) * 0.1
    ln_gamma = 1.0 + 0.1 * jax.random.normal(kg, (C_out,), dtype=jnp.float32)
    ln_beta = 0.1 * jax.random.normal(kbe, (C_out,), dtype=jnp.float32)

    fwd_exact = jax.jit(functools.partial(
        wav2vec2_layernorm_conv_layer, stride=stride,
        matmul_dtype=jnp.float32))                                  # exact path
    fwd_fast = jax.jit(functools.partial(
        wav2vec2_layernorm_conv_layer, stride=stride,
        matmul_dtype=jnp.bfloat16, out_dtype=jnp.bfloat16))         # fast path

    out_exact = jax.block_until_ready(fwd_exact(x, weight, bias, ln_gamma, ln_beta))
    out_fast = jax.block_until_ready(fwd_fast(x, weight, bias, ln_gamma, ln_beta))

    L_out = (L - K) // stride + 1
    ref = _reference(x, weight, bias, ln_gamma, ln_beta, stride=stride)

    assert out_exact.shape == (B, C_out, L_out), out_exact.shape
    assert out_fast.shape == (B, C_out, L_out), out_fast.shape
    assert jnp.allclose(out_exact, ref, atol=1e-4, rtol=1e-4), "f32 path mismatch"
    assert jnp.allclose(out_fast.astype(jnp.float32), ref,
                        atol=5e-2, rtol=5e-2), "bf16 path mismatch"

    print("KERNEL_OK")
</pallas_src>

<mosaic_0001>
module attributes {stable_mosaic.version = 11 : i64} {
  func.func @_conv_ln_gelu_kernel(%arg0: i32, %arg1: i32, %arg2: memref<1x128x8xf32, #tpu.memory_space<vmem>>, %arg3: memref<1x8x8xf32, #tpu.memory_space<vmem>>, %arg4: memref<2x8x128xf32, #tpu.memory_space<vmem>>, %arg5: memref<1x128xf32, #tpu.memory_space<vmem>>, %arg6: memref<1x128xf32, #tpu.memory_space<vmem>>, %arg7: memref<1x128xf32, #tpu.memory_space<vmem>>, %arg8: memref<1x128x128xf32, #tpu.memory_space<vmem>>, %arg9: memref<136x8xf32, #tpu.memory_space<vmem>>) attributes {dimension_semantics = [#tpu.dimension_semantics<parallel>, #tpu.dimension_semantics<parallel>], iteration_bounds = array<i64: 2, 1>, scalar_prefetch = 0 : i64, scratch_operands = 1 : i64, tpu.core_type = #tpu.core_type<tc>, window_params = [{transform_indices = @transform_0, window_bounds = array<i64: 1, 128, 8>}, {transform_indices = @transform_1, window_bounds = array<i64: 1, 8, 8>}, {pipeline_mode = #tpu.pipeline_mode<synchronous>, transform_indices = @transform_2, window_bounds = array<i64: 2, 8, 128>}, {pipeline_mode = #tpu.pipeline_mode<synchronous>, transform_indices = @transform_3, window_bounds = array<i64: 1, 128>}, {pipeline_mode = #tpu.pipeline_mode<synchronous>, transform_indices = @transform_4, window_bounds = array<i64: 1, 128>}, {pipeline_mode = #tpu.pipeline_mode<synchronous>, transform_indices = @transform_5, window_bounds = array<i64: 1, 128>}, {transform_indices = @transform_6, window_bounds = array<i64: 1, 128, 128>}]} {
    %c0 = arith.constant 0 : index
    %c0_0 = arith.constant 0 : index
    %c0_1 = arith.constant 0 : index
    %0 = vector.load %arg2[%c0, %c0_0, %c0_1] : memref<1x128x8xf32, #tpu.memory_space<vmem>>, vector<1x128x8xf32>
    %1 = vector.shape_cast %0 : vector<1x128x8xf32> to vector<128x8xf32>
    %c0_2 = arith.constant 0 : index
    %c0_3 = arith.constant 0 : index
    %2 = vector.load %arg9[%c0_2, %c0_3] : memref<136x8xf32, #tpu.memory_space<vmem>>, vector<128x8xf32>
    tpu.vector_store %arg9[%c0_2, %c0_3], %1 {strides = array<i32>} : memref<136x8xf32, #tpu.memory_space<vmem>>, vector<128x8xf32>,
    %c0_4 = arith.constant 0 : index
    %c0_5 = arith.constant 0 : index
    %c0_6 = arith.constant 0 : index
    %3 = vector.load %arg3[%c0_4, %c0_5, %c0_6] : memref<1x8x8xf32, #tpu.memory_space<vmem>>, vector<1x8x8xf32>
    %4 = vector.shape_cast %3 : vector<1x8x8xf32> to vector<8x8xf32>
    %c128 = arith.constant 128 : index
    %c0_7 = arith.constant 0 : index
    %5 = vector.load %arg9[%c128, %c0_7] : memref<136x8xf32, #tpu.memory_space<vmem>>, vector<8x8xf32>
    tpu.vector_store %arg9[%c128, %c0_7], %4 {strides = array<i32>} : memref<136x8xf32, #tpu.memory_space<vmem>>, vector<8x8xf32>,
    %c0_8 = arith.constant 0 : index
    %c0_9 = arith.constant 0 : index
    %6 = vector.load %arg9[%c0_8, %c0_9] : memref<136x8xf32, #tpu.memory_space<vmem>>, vector<128x8xf32>
    %c0_10 = arith.constant 0 : index
    %c0_11 = arith.constant 0 : index
    %c0_12 = arith.constant 0 : index
    %7 = vector.load %arg4[%c0_10, %c0_11, %c0_12] : memref<2x8x128xf32, #tpu.memory_space<vmem>>, vector<1x8x128xf32>
    %8 = vector.shape_cast %7 : vector<1x8x128xf32> to vector<8x128xf32>
    %cst = arith.constant dense<0.000000e+00> : vector<128x128xf32>
    %9 = tpu.matmul %6, %8, %cst {dimension_numbers = #tpu.dot_dimension_numbers<[1], [0], [0], [1], [0, 0, 1, 1], [], []>} : vector<128x8xf32>, vector<8x128xf32>, vector<128x128xf32> -> vector<128x128xf32>
    %c0_13 = arith.constant 0 : index
    %c0_14 = arith.constant 0 : index
    %10 = vector.load %arg5[%c0_13, %c0_14] : memref<1x128xf32, #tpu.memory_space<vmem>>, vector<1x128xf32>
    %11 = vector.broadcast %10 : vector<1x128xf32> to vector<128x128xf32>
    %12 = arith.addf %9, %11 : vector<128x128xf32>
    %c1 = arith.constant 1 : index
    %c0_15 = arith.constant 0 : index
    %13 = vector.load %arg9[%c1, %c0_15] : memref<136x8xf32, #tpu.memory_space<vmem>>, vector<128x8xf32>
    %c1_16 = arith.constant 1 : index
    %c0_17 = arith.constant 0 : index
    %c0_18 = arith.constant 0 : index
    %14 = vector.load %arg4[%c1_16, %c0_17, %c0_18] : memref<2x8x128xf32, #tpu.memory_space<vmem>>, vector<1x8x128xf32>
    %15 = vector.shape_cast %14 : vector<1x8x128xf32> to vector<8x128xf32>
    %cst_19 = arith.constant dense<0.000000e+00> : vector<128x128xf32>
    %16 = tpu.matmul %13, %15, %cst_19 {dimension_numbers = #tpu.dot_dimension_numbers<[1], [0], [0], [1], [0, 0, 1, 1], [], []>} : vector<128x8xf32>, vector<8x128xf32>, vector<128x128xf32> -> vector<128x128xf32>
    %17 = arith.addf %12, %16 : vector<128x128xf32>
    %cst_20 = arith.constant dense<0.000000e+00> : vector<128xf32>
    %18 = vector.multi_reduction <add>, %17, %cst_20 [1] : vector<128x128xf32> to vector<128xf32>
    %19 = vector.shape_cast %18 : vector<128xf32> to vector<128x1xf32>
    %20 = arith.mulf %17, %17 : vector<128x128xf32>
    %cst_21 = arith.constant dense<0.000000e+00> : vector<128xf32>
    %21 = vector.multi_reduction <add>, %20, %cst_21 [1] : vector<128x128xf32> to vector<128xf32>
    %22 = vector.shape_cast %21 : vector<128xf32> to vector<128x1xf32>
    %cst_22 = arith.constant 3.125000e-02 : f32
    %23 = vector.broadcast %cst_22 : f32 to vector<128x1xf32>
    %24 = arith.mulf %19, %23 : vector<128x1xf32>
    %cst_23 = arith.constant 3.125000e-02 : f32
    %25 = vector.broadcast %cst_23 : f32 to vector<128x1xf32>
    %26 = arith.mulf %22, %25 : vector<128x1xf32>
    %27 = arith.mulf %24, %24 : vector<128x1xf32>
    %28 = arith.subf %26, %27 : vector<128x1xf32>
    %cst_24 = arith.constant 0.000000e+00 : f32
    %29 = vector.broadcast %cst_24 : f32 to vector<128x1xf32>
    %30 = arith.maximumf %28, %29 : vector<128x1xf32>
    %31 = vector.broadcast %24 : vector<128x1xf32> to vector<128x128xf32>
    %32 = arith.subf %17, %31 : vector<128x128xf32>
    %cst_25 = arith.constant 9.99999974E-6 : f32
    %33 = vector.broadcast %cst_25 : f32 to vector<128x1xf32>
    %34 = arith.addf %30, %33 : vector<128x1xf32>
    %35 = math.rsqrt %34 : vector<128x1xf32>
    %36 = vector.broadcast %35 : vector<128x1xf32> to vector<128x128xf32>
    %37 = arith.mulf %32, %36 : vector<128x128xf32>
    %c0_26 = arith.constant 0 : index
    %c0_27 = arith.constant 0 : index
    %38 = vector.load %arg6[%c0_26, %c0_27] : memref<1x128xf32, #tpu.memory_space<vmem>>, vector<1x128xf32>
    %39 = vector.broadcast %38 : vector<1x128xf32> to vector<128x128xf32>
    %40 = arith.mulf %37, %39 : vector<128x128xf32>
    %c0_28 = arith.constant 0 : index
    %c0_29 = arith.constant 0 : index
    %41 = vector.load %arg7[%c0_28, %c0_29] : memref<1x128xf32, #tpu.memory_space<vmem>>, vector<1x128xf32>
    %42 = vector.broadcast %41 : vector<1x128xf32> to vector<128x128xf32>
    %43 = arith.addf %40, %42 : vector<128x128xf32>
    %cst_30 = arith.constant 5.000000e-01 : f32
    %44 = vector.broadcast %cst_30 : f32 to vector<128x128xf32>
    %45 = arith.mulf %44, %43 : vector<128x128xf32>
    %cst_31 = arith.constant 0.707106769 : f32
    %46 = vector.broadcast %cst_31 : f32 to vector<128x128xf32>
    %47 = arith.mulf %43, %46 : vector<128x128xf32>
    %48 = math.erf %47 : vector<128x128xf32>
    %cst_32 = arith.constant 1.000000e+00 : f32
    %49 = vector.broadcast %cst_32 : f32 to vector<128x128xf32>
    %50 = arith.addf %49, %48 : vector<128x128xf32>
    %51 = arith.mulf %45, %50 : vector<128x128xf32>
    %52 = tpu.transpose %51, [1, 0] : vector<128x128xf32> -> vector<128x128xf32>
    %c0_33 = arith.constant 0 : index
    %c0_34 = arith.constant 0 : index
    %c0_35 = arith.constant 0 : index
    %53 = vector.load %arg8[%c0_33, %c0_34, %c0_35] : memref<1x128x128xf32, #tpu.memory_space<vmem>>, vector<1x128x128xf32>
    %54 = vector.shape_cast %53 : vector<1x128x128xf32> to vector<128x128xf32>
    %55 = vector.shape_cast %52 : vector<128x128xf32> to vector<1x128x128xf32>
    tpu.vector_store %arg8[%c0_33, %c0_34, %c0_35], %55 {strides = array<i32>} : memref<1x128x128xf32, #tpu.memory_space<vmem>>, vector<1x128x128xf32>,
    return
  }
  func.func @transform_0(%arg0: i32, %arg1: i32) -> (i32, i32, i32) {
    %c0_i32 = arith.constant 0 : i32
    %c0_i32_0 = arith.constant 0 : i32
    return %arg0, %arg1, %c0_i32 : i32, i32, i32
  }
  func.func @transform_1(%arg0: i32, %arg1: i32) -> (i32, i32, i32) {
    %c1_i32 = arith.constant 1 : i32
    %0 = arith.addi %arg1, %c1_i32 : i32
    %c16_i32 = arith.constant 16 : i32
    %1 = arith.muli %0, %c16_i32 : i32
    %c0_i32 = arith.constant 0 : i32
    %c0_i32_0 = arith.constant 0 : i32
    return %arg0, %1, %c0_i32 : i32, i32, i32
  }
  func.func @transform_2(%arg0: i32, %arg1: i32) -> (i32, i32, i32) {
    %c0_i32 = arith.constant 0 : i32
    %c0_i32_0 = arith.constant 0 : i32
    %c0_i32_1 = arith.constant 0 : i32
    %c0_i32_2 = arith.constant 0 : i32
    return %c0_i32, %c0_i32_0, %c0_i32_1 : i32, i32, i32
  }
  func.func @transform_3(%arg0: i32, %arg1: i32) -> (i32, i32) {
    %c0_i32 = arith.constant 0 : i32
    %c0_i32_0 = arith.constant 0 : i32
    %c0_i32_1 = arith.constant 0 : i32
    return %c0_i32, %c0_i32_0 : i32, i32
  }
  func.func @transform_4(%arg0: i32, %arg1: i32) -> (i32, i32) {
    %c0_i32 = arith.constant 0 : i32
    %c0_i32_0 = arith.constant 0 : i32
    %c0_i32_1 = arith.constant 0 : i32
    return %c0_i32, %c0_i32_0 : i32, i32
  }
  func.func @transform_5(%arg0: i32, %arg1: i32) -> (i32, i32) {
    %c0_i32 = arith.constant 0 : i32
    %c0_i32_0 = arith.constant 0 : i32
    %c0_i32_1 = arith.constant 0 : i32
    return %c0_i32, %c0_i32_0 : i32, i32
  }
  func.func @transform_6(%arg0: i32, %arg1: i32) -> (i32, i32, i32) {
    %c0_i32 = arith.constant 0 : i32
    %c0_i32_0 = arith.constant 0 : i32
    return %arg0, %c0_i32, %arg1 : i32, i32, i32
  }
}

</mosaic_0001>

<bundles_post_ra>
// kernel: wav2vec2_layernorm_conv_layer.1
= control target key start
LH: loop header
LB: loop body
LE: loop exit
PB: predicated region body
PF: predicated region fallthrough
CT: control target
= control target key end

     0   :  { %s2150_s21 = smov 0   ;;  %s2152_s22 = smov 0   ;;  %s3519_s0 = inlined_call_operand.vmem [shape: f32[2,136,8], index: 0, kind: input, shape index: {}, may-alias: {0,1}]   ;;  %s3520_s1 = inlined_call_operand.vmem [shape: f32[2,136,8], index: 1, kind: input, shape index: {}, may-alias: {0,1}]   ;;  %s3521_s2 = inlined_call_operand.vmem [shape: f32[2,8,128], index: 2, kind: input, shape index: {}]   ;;  %s3522_s3 = inlined_call_operand.vmem [shape: f32[1,128], index: 3, kind: input, shape index: {}]   ;;  %s3523_s4 = inlined_call_operand.vmem [shape: f32[1,128], index: 4, kind: input, shape index: {}]   ;;  %s3524_s5 = inlined_call_operand.vmem [shape: f32[1,128], index: 5, kind: input, shape index: {}]   ;;  %s3525_s6 = inlined_call_operand.vmem [shape: f32[2,128,128], index: 6, kind: output, shape index: {}]  }
   0x1   :  { %s2154_s23 = smov 0  }
   0x2 LB: > { %s28_s24 = sadd.s32 1, %s2109_s22  ;;  %p1934_p0 = scmp.ge.s32.totalorder %s2113_s23, 1  ;;  %s2113_s23 = sphi %s2154_s23, %s16_s23   ;;  %s2109_s22 = sphi %s2152_s22, %s3634_s22   ;;  %s2105_s21 = sphi %s2150_s21, %s3633_s21  }
   0x3   : > { %p30_p1 = scmp.ge.s32.totalorder %s28_s24, 2  ;;  %p264_p2 = scmp.lt.s32.totalorder %s2113_s23, 3 }
   0x5   : > { %s3636_s24 = smov (%p30_p1, %s28_s24), 0  ;;  %p265_p3 = pnand %p1934_p0, %p264_p2 }
   0x7   : > { %268 = sbr.rel (%p265_p3) target bundleno = 719 (0x2cf), region = 44 }
   0xc   : > { %v404_v0 = vld [vmem:[%s3521_s2] sm:$0xff]  ;;  %p320_p4 = scmp.lt.s32.totalorder %s2105_s21, 1  ;;  %v1955_v1 = vld [vmem:[%s3521_s2 + $0x8] sm:$0xff]  ;;  %vm369_vm0 = vcmask 64512  }
   0xd   : > { %472 = vmatpush.msra.mxu0 %v404_v0  ;;  %1993 = vmatpush.msra.mxu2 %v404_v0  ;;  %v2257_v51 = vld [vmem:[%s3522_s3] ss:$0 sm:$0xff] }
   0xe   : > { %s3638_s21 = smov (!%p320_p4, %s2105_s21), 1  ;;  %603 = vmatpush.msra.mxu1 %v1955_v1  ;;  %1994 = vmatpush.msra.mxu3 %v1955_v1 }
   0xf   : > { %s1995_s29 = smul.u32 136, %s3638_s21  ;;  %s1992_s27 = sshll.u32 %s3638_s21, 7 }
  0x10   : > { %s3492_s30 = scalar_lea.vmem %s3525_s6, %s1992_s27 }
  0x11   : > { %s2182_s8 = scalar_lea.vmem %s3519_s0, %s1995_s29  ;;  %s1991_s9 = sadd.s32 128, %s1995_s29 }
  0x12   : > { %v353_v2 = vld [vmem:[%s2182_s8] sm:$0xff]  ;;  %v354_v4 = vld [vmem:[%s2182_s8 + $0x8] sm:$0xff]  ;;  %v355_v6 = vld [vmem:[%s2182_s8 + $0x10] sm:$0xff]  ;;  %s342_s12 = scalar_lea.vmem %s3520_s1, %s1991_s9 }
  0x13   : > { %v361_v3 = vld [vmem:[%s2182_s8 + $0x40] sm:$0xff]  ;;  %370 = vst.msk [vmem:[#allocation2] sm:$0xff] %vm369_vm0, %v353_v2  ;;  %v362_v5 = vld [vmem:[%s2182_s8 + $0x48] sm:$0xff]  ;;  %v363_v7 = vld [vmem:[%s2182_s8 + $0x50] sm:$0xff] }
  0x14   : > { %378 = vst.msk [vmem:[#allocation2 + $0x40] sm:$0xff] %vm369_vm0, %v361_v3  ;;  %v356_v8 = vld [vmem:[%s2182_s8 + $0x18] sm:$0xff]  ;;  %v357_v9 = vld [vmem:[%s2182_s8 + $0x20] sm:$0xff]  ;;  %v358_v11 = vld [vmem:[%s2182_s8 + $0x28] sm:$0xff] }
  0x15   : > { %371 = vst.msk [vmem:[#allocation2 + $0x8] sm:$0xff] %vm369_vm0, %v354_v4  ;;  %v364_v10 = vld [vmem:[%s2182_s8 + $0x58] sm:$0xff]  ;;  %v359_v16 = vld [vmem:[%s2182_s8 + $0x30] sm:$0xff]  ;;  %v365_v19 = vld [vmem:[%s2182_s8 + $0x60] sm:$0xff] }
  0x16   : > { %379 = vst.msk [vmem:[#allocation2 + $0x48] sm:$0xff] %vm369_vm0, %v362_v5  ;;  %v360_v22 = vld [vmem:[%s2182_s8 + $0x38] sm:$0xff]  ;;  %v366_v25 = vld [vmem:[%s2182_s8 + $0x68] sm:$0xff]  ;;  %v367_v30 = vld [vmem:[%s2182_s8 + $0x70] sm:$0xff] }
  0x17   : > { %372 = vst.msk [vmem:[#allocation2 + $0x10] sm:$0xff] %vm369_vm0, %v355_v6  ;;  %v368_v33 = vld [vmem:[%s2182_s8 + $0x78] sm:$0xff]  ;;  %v386_v34 = vld [vmem:[%s342_s12] sm:$0xff] }
  0x18   : > { %380 = vst.msk [vmem:[#allocation2 + $0x50] sm:$0xff] %vm369_vm0, %v363_v7 }
  0x19   : > { %373 = vst.msk [vmem:[#allocation2 + $0x18] sm:$0xff] %vm369_vm0, %v356_v8 }
  0x1a   : > { %v388_v12 = vld [vmem:[#allocation2] sm:$0xff]  ;;  %374 = vst.msk [vmem:[#allocation2 + $0x20] sm:$0xff] %vm369_vm0, %v357_v9 }
  0x1b   : > { %1939 = vmatmul.msk.f32.vlgmr.msra.gmra.mxu0 %vm369_vm0, %v388_v12  ;;  %v396_v13 = vld [vmem:[#allocation2 + $0x40] sm:$0xff]  ;;  %381 = vst.msk [vmem:[#allocation2 + $0x58] sm:$0xff] %vm369_vm0, %v364_v10 }
  0x1c   : > { %1947 = vmatmul.msk.f32.vlgmr.msra.gmra.mxu2 %vm369_vm0, %v396_v13  ;;  %v522_v14 = vld [vmem:[#allocation2 + $0x1] sm:$0xff]  ;;  %375 = vst.msk [vmem:[#allocation2 + $0x28] sm:$0xff] %vm369_vm0, %v358_v11 }
  0x1d   : > { %1956 = vmatmul.msk.f32.vlgmr.msra.gmra.mxu1 %vm369_vm0, %v522_v14  ;;  %v530_v15 = vld [vmem:[#allocation2 + $0x41] sm:$0xff]  ;;  %376 = vst.msk [vmem:[#allocation2 + $0x30] sm:$0xff] %vm369_vm0, %v359_v16 }
  0x1e   : > { %1964 = vmatmul.msk.f32.vlgmr.msra.gmra.mxu3 %vm369_vm0, %v530_v15  ;;  %v389_v17 = vld [vmem:[#allocation2 + $0x8] sm:$0xff]  ;;  %382 = vst.msk [vmem:[#allocation2 + $0x60] sm:$0xff] %vm369_vm0, %v365_v19  ;;  %v390_v23 = vld [vmem:[#allocation2 + $0x10] sm:$0xff] }
  0x1f   : > { %v397_v18 = vld [vmem:[#allocation2 + $0x48] sm:$0xff]  ;;  %377 = vst.msk [vmem:[#allocation2 + $0x38] sm:$0xff] %vm369_vm0, %v360_v22  ;;  %v398_v24 = vld [vmem:[#allocation2 + $0x50] sm:$0xff] }
  0x20   : > { %v523_v20 = vld [vmem:[#allocation2 + $0x9] sm:$0xff]  ;;  %v524_v26 = vld [vmem:[#allocation2 + $0x11] sm:$0xff]  ;;  %383 = vst.msk [vmem:[#allocation2 + $0x68] sm:$0xff] %vm369_vm0, %v366_v25 }
  0x21   : > { %v531_v21 = vld [vmem:[#allocation2 + $0x49] sm:$0xff]  ;;  %v391_v28 = vld [vmem:[#allocation2 + $0x18] sm:$0xff]  ;;  %384 = vst.msk [vmem:[#allocation2 + $0x70] sm:$0xff] %vm369_vm0, %v367_v30  ;;  %v392_v35 = vld [vmem:[#allocation2 + $0x20] sm:$0xff] }
  0x22   : > { %v532_v27 = vld [vmem:[#allocation2 + $0x51] sm:$0xff]  ;;  %v525_v31 = vld [vmem:[#allocation2 + $0x19] sm:$0xff]  ;;  %385 = vst.msk [vmem:[#allocation2 + $0x78] sm:$0xff] %vm369_vm0, %v368_v33 }
  0x23   : > { %1940 = vmatmul.msk.f32.gmra.mxu0 %vm369_vm0, %v389_v17  ;;  %v399_v29 = vld [vmem:[#allocation2 + $0x58] sm:$0xff]  ;;  %387 = vst.msk [vmem:[#allocation2 + $0x80] sm:$0xff] %vm369_vm0, %v386_v34  ;;  %v526_v37 = vld [vmem:[#allocation2 + $0x21] sm:$0xff] }
  0x24   : > { %1948 = vmatmul.msk.f32.gmra.mxu2 %vm369_vm0, %v397_v18  ;;  %v393_v39 = vld [vmem:[#allocation2 + $0x28] sm:$0xff]  ;;  %v394_v43 = vld [vmem:[#allocation2 + $0x30] sm:$0xff] }
  0x25   : > { %1957 = vmatmul.msk.f32.gmra.mxu1 %vm369_vm0, %v523_v20  ;;  %v533_v32 = vld [vmem:[#allocation2 + $0x59] sm:$0xff]  ;;  %v527_v41 = vld [vmem:[#allocation2 + $0x29] sm:$0xff] }
  0x26   : > { %1965 = vmatmul.msk.f32.gmra.mxu3 %vm369_vm0, %v531_v21  ;;  %v400_v36 = vld [vmem:[#allocation2 + $0x60] sm:$0xff]  ;;  %v528_v45 = vld [vmem:[#allocation2 + $0x31] sm:$0xff] }
  0x27   : > { %v534_v38 = vld [vmem:[#allocation2 + $0x61] sm:$0xff]  ;;  %v395_v47 = vld [vmem:[#allocation2 + $0x38] sm:$0xff] }
  0x28   : > { %v401_v40 = vld [vmem:[#allocation2 + $0x68] sm:$0xff]  ;;  %v402_v44 = vld [vmem:[#allocation2 + $0x70] sm:$0xff]  ;;  %v529_v49 = vld [vmem:[#allocation2 + $0x39] sm:$0xff] }
  0x29   : > { %v535_v42 = vld [vmem:[#allocation2 + $0x69] sm:$0xff]  ;;  %v536_v46 = vld [vmem:[#allocation2 + $0x71] sm:$0xff] }
  0x2a   : > { %v403_v48 = vld [vmem:[#allocation2 + $0x78] sm:$0xff] }
  0x2b   : > { %1941 = vmatmul.msk.f32.gmra.mxu0 %vm369_vm0, %v390_v23  ;;  %v537_v50 = vld [vmem:[#allocation2 + $0x79] sm:$0xff] }
  0x2c   : > { %1949 = vmatmul.msk.f32.gmra.mxu2 %vm369_vm0, %v398_v24 }
  0x2d   : > { %1958 = vmatmul.msk.f32.gmra.mxu1 %vm369_vm0, %v524_v26 }
  0x2e   : > { %1966 = vmatmul.msk.f32.gmra.mxu3 %vm369_vm0, %v532_v27 }
  0x33   : > { %1942 = vmatmul.msk.f32.gmra.mxu0 %vm369_vm0, %v391_v28 }
  0x34   : > { %1950 = vmatmul.msk.f32.gmra.mxu2 %vm369_vm0, %v399_v29 }
  0x35   : > { %1959 = vmatmul.msk.f32.gmra.mxu1 %vm369_vm0, %v525_v31 }
  0x36   : > { %1967 = vmatmul.msk.f32.gmra.mxu3 %vm369_vm0, %v533_v32 }
  0x3b   : > { %1943 = vmatmul.msk.f32.gmra.mxu0 %vm369_vm0, %v392_v35 }
  0x3c   : > { %1951 = vmatmul.msk.f32.gmra.mxu2 %vm369_vm0, %v400_v36 }
  0x3d   : > { %1960 = vmatmul.msk.f32.gmra.mxu1 %vm369_vm0, %v526_v37 }
  0x3e   : > { %1968 = vmatmul.msk.f32.gmra.mxu3 %vm369_vm0, %v534_v38 }
  0x43   : > { %1944 = vmatmul.msk.f32.gmra.mxu0 %vm369_vm0, %v393_v39 }
  0x44   : > { %1952 = vmatmul.msk.f32.gmra.mxu2 %vm369_vm0, %v401_v40 }
  0x45   : > { %1961 = vmatmul.msk.f32.gmra.mxu1 %vm369_vm0, %v527_v41 }
  0x46   : > { %1969 = vmatmul.msk.f32.gmra.mxu3 %vm369_vm0, %v535_v42 }
  0x4b   : > { %1945 = vmatmul.msk.f32.gmra.mxu0 %vm369_vm0, %v394_v43 }
  0x4c   : > { %1953 = vmatmul.msk.f32.gmra.mxu2 %vm369_vm0, %v402_v44 }
  0x4d   : > { %1962 = vmatmul.msk.f32.gmra.mxu1 %vm369_vm0, %v528_v45 }
  0x4e   : > { %1970 = vmatmul.msk.f32.gmra.mxu3 %vm369_vm0, %v536_v46 }
  0x53   : > { %1946 = vmatmul.msk.f32.gmra.mxu0 %vm369_vm0, %v395_v47 }
  0x54   : > { %1954 = vmatmul.msk.f32.gmra.mxu2 %vm369_vm0, %v403_v48 }
  0x55   : > { %1963 = vmatmul.msk.f32.gmra.mxu1 %vm369_vm0, %v529_v49 }
  0x56   : > { %1971 = vmatmul.msk.f32.gmra.mxu3 %vm369_vm0, %v537_v50 }
  0x98   : > { %v474_v52 = vpop.f32.mrf.mxu0 }
  0x99   : > { %v475_v53 = vadd.f32 %v2257_v51, %v474_v52 }
  0x9a   : > { %v605_v54 = vpop.f32.mrf.mxu1 }
  0x9b   : > { %v2260_v55 = vadd.f32 %v605_v54, %v475_v53 }
  0x9d   : > { %669 = vadd.xlane.f32.xlu0 %v2260_v55  ;;  %v701_v62 = vmul.f32 %v2260_v55, %v2260_v55 }
  0x9f   : > { %v498_v56 = vpop.f32.mrf.mxu2 }
  0xa0   : > { %v499_v57 = vadd.f32 %v2257_v51, %v498_v56  ;;  %v477_v58 = vpop.f32.mrf.mxu0 }
  0xa1   : > { %v629_v59 = vpop.f32.mrf.mxu3  ;;  %v478_v0 = vadd.f32 %v2257_v51, %v477_v58 }
  0xa2   : > { %v2264_v60 = vadd.f32 %v629_v59, %v499_v57  ;;  %v608_v61 = vpop.f32.mrf.mxu1 }
  0xa3   : > { %v2274_v6 = vadd.f32 %v608_v61, %v478_v0 }
  0xa4   : > { %685 = vadd.xlane.f32.xlu1 %v2264_v60  ;;  %v709_v63 = vmul.f32 %v2264_v60, %v2264_v60 }
  0xa5   : > { %717 = vadd.xlane.f32.xlu0 %v701_v62  ;;  %v702_v15 = vmul.f32 %v2274_v6, %v2274_v6 }
  0xa6   : > { %733 = vadd.xlane.f32.xlu2 %v709_v63 }
  0xa7   : > { %v501_v1 = vpop.f32.mrf.mxu2 }
  0xa8   : > { %v480_v2 = vpop.f32.mrf.mxu0  ;;  %v502_v3 = vadd.f32 %v2257_v51, %v501_v1 }
  0xa9   : > { %v481_v4 = vadd.f32 %v2257_v51, %v480_v2  ;;  %v632_v5 = vpop.f32.mrf.mxu3 }
  0xaa   : > { %v611_v7 = vpop.f32.mrf.mxu1  ;;  %v2276_v8 = vadd.f32 %v632_v5, %v502_v3 }
  0xab   : > { %v2278_v9 = vadd.f32 %v611_v7, %v481_v4 }
  0xac   : > { %671 = vadd.xlane.f32.xlu1 %v2274_v6  ;;  %v710_v24 = vmul.f32 %v2276_v8, %v2276_v8 }
  0xad   : > { %687 = vadd.xlane.f32.xlu0 %v2276_v8  ;;  %v703_v18 = vmul.f32 %v2278_v9, %v2278_v9 }
  0xae   : > { %673 = vadd.xlane.f32.xlu2 %v2278_v9 }
  0xaf   : > { %v504_v10 = vpop.f32.mrf.mxu2 }
  0xb0   : > { %v483_v11 = vpop.f32.mrf.mxu0  ;;  %v505_v13 = vadd.f32 %v2257_v51, %v504_v10 }
  0xb1   : > { %v484_v12 = vadd.f32 %v2257_v51, %v483_v11  ;;  %v635_v16 = vpop.f32.mrf.mxu3 }
  0xb2   : > { %v614_v14 = vpop.f32.mrf.mxu1  ;;  %v2292_v19 = vadd.f32 %v635_v16, %v505_v13 }
  0xb3   : > { %v2287_v17 = vadd.f32 %v614_v14, %v484_v12 }
  0xb4   : > { %719 = vadd.xlane.f32.xlu1 %v702_v15  ;;  %3542 = vst [vmem:[#allocation3_spill] sm:$0xff] %v2292_v19  ;;  %v711_v22 = vmul.f32 %v2292_v19, %v2292_v19 }
  0xb5   : > { %675 = vadd.xlane.f32.xlu0 %v2287_v17  ;;  %v704_v32 = vmul.f32 %v2287_v17, %v2287_v17 }
  0xb6   : > { %721 = vadd.xlane.f32.xlu2 %v703_v18 }
  0xb7   : > { %v507_v25 = vpop.f32.mrf.mxu2 }
  0xb8   : > { %v486_v20 = vpop.f32.mrf.mxu0  ;;  %v508_v37 = vadd.f32 %v2257_v51, %v507_v25 }
  0xb9   : > { %v487_v21 = vadd.f32 %v2257_v51, %v486_v20  ;;  %v638_v28 = vpop.f32.mrf.mxu3 }
  0xba   : > { %v617_v23 = vpop.f32.mrf.mxu1  ;;  %v2318_v42 = vadd.f32 %v638_v28, %v508_v37 }
  0xbb   : > { %v2299_v26 = vadd.f32 %v617_v23, %v487_v21 }
  0xbc   : > { %735 = vadd.xlane.f32.xlu1 %v710_v24  ;;  %v712_v48 = vmul.f32 %v2318_v42, %v2318_v42 }
  0xbd   : > { %737 = vadd.xlane.f32.xlu0 %v711_v22  ;;  %v705_v29 = vmul.f32 %v2299_v26, %v2299_v26 }
  0xbe   : > { %689 = vadd.xlane.f32.xlu2 %v2292_v19 }
  0xbf   : > { %v510_v34 = vpop.f32.mrf.mxu2 }
  0xc0   : > { %v489_v27 = vpop.f32.mrf.mxu0  ;;  %v511_v53 = vadd.f32 %v2257_v51, %v510_v34 }
  0xc1   : > { %v490_v30 = vadd.f32 %v2257_v51, %v489_v27  ;;  %v641_v40 = vpop.f32.mrf.mxu3 }
  0xc2   : > { %v620_v31 = vpop.f32.mrf.mxu1  ;;  %v2330_v56 = vadd.f32 %v641_v40, %v511_v53 }
  0xc3   : > { %v2307_v33 = vadd.f32 %v620_v31, %v490_v30 }
  0xc4   : > { %723 = vadd.xlane.f32.xlu1 %v704_v32  ;;  %3543 = vst [vmem:[#allocation4_spill] sm:$0xff] %v2330_v56  ;;  %v713_v61 = vmul.f32 %v2330_v56, %v2330_v56 }
  0xc5   : > { %725 = vadd.xlane.f32.xlu0 %v705_v29  ;;  %v706_v39 = vmul.f32 %v2307_v33, %v2307_v33 }
  0xc6   : > { %677 = vadd.xlane.f32.xlu2 %v2299_v26 }
  0xc7   : > { %v513_v45 = vpop.f32.mrf.mxu2 }
  0xc8   : > { %v492_v35 = vpop.f32.mrf.mxu0  ;;  %v514_v57 = vadd.f32 %v2257_v51, %v513_v45 }
  0xc9   : > { %v493_v36 = vadd.f32 %v2257_v51, %v492_v35  ;;  %v644_v50 = vpop.f32.mrf.mxu3 }
  0xca   : > { %v623_v38 = vpop.f32.mrf.mxu1  ;;  %v2335_v59 = vadd.f32 %v644_v50, %v514_v57 }
  0xcb   : > { %v2314_v41 = vadd.f32 %v623_v38, %v493_v36 }
  0xcc   : > { %679 = vadd.xlane.f32.xlu1 %v2307_v33  ;;  %v714_v63 = vmul.f32 %v2335_v59, %v2335_v59 }
  0xcd   : > { %681 = vadd.xlane.f32.xlu0 %v2314_v41  ;;  %v707_v44 = vmul.f32 %v2314_v41, %v2314_v41 }
  0xce   : > { %727 = vadd.xlane.f32.xlu2 %v706_v39 }
  0xcf   : > { %v516_v54 = vpop.f32.mrf.mxu2 }
  0xd0   : > { %v495_v43 = vpop.f32.mrf.mxu0  ;;  %v517_v62 = vadd.f32 %v2257_v51, %v516_v54 }
  0xd1   : > { %v496_v46 = vadd.f32 %v2257_v51, %v495_v43  ;;  %v647_v58 = vpop.f32.mrf.mxu3 }
  0xd2   : > { %v626_v47 = vpop.f32.mrf.mxu1  ;;  %v2343_v1 = vadd.f32 %v647_v58, %v517_v62 }
  0xd3   : > { %v2325_v49 = vadd.f32 %v626_v47, %v496_v46 }
  0xd4   : > { %729 = vadd.xlane.f32.xlu1 %v707_v44  ;;  %3544 = vst [vmem:[#allocation5_spill] sm:$0xff] %v2343_v1  ;;  %v715_v4 = vmul.f32 %v2343_v1, %v2343_v1 }
  0xd5   : > { %v708_v52 = vmul.f32 %v2325_v49, %v2325_v49 }
  0xd6   : > { %739 = vadd.xlane.f32.xlu2 %v712_v48 }
  0xd7   : > { %731 = vadd.xlane.f32.xlu0 %v708_v52  ;;  %v519_v0 = vpop.f32.mrf.mxu2 }
  0xd8   : > { %v520_v2 = vadd.f32 %v2257_v51, %v519_v0 }
  0xd9   : > { %v650_v3 = vpop.f32.mrf.mxu3 }
  0xda   : > { %v2349_v5 = vadd.f32 %v650_v3, %v520_v2 }
  0xdc   : > { %691 = vadd.xlane.f32.xlu1 %v2318_v42  ;;  %3545 = vst [vmem:[#allocation6_spill] sm:$0xff] %v2349_v5  ;;  %v716_v7 = vmul.f32 %v2349_v5, %v2349_v5 }
  0xde   : > { %683 = vadd.xlane.f32.xlu2 %v2325_v49 }
  0xdf   : > { %693 = vadd.xlane.f32.xlu0 %v2330_v56 }
  0xe4   : > { %741 = vadd.xlane.f32.xlu1 %v713_v61 }
  0xe6   : > { %695 = vadd.xlane.f32.xlu2 %v2335_v59 }
  0xe7   : > { %743 = vadd.xlane.f32.xlu0 %v714_v63 }
  0xec   : > { %697 = vadd.xlane.f32.xlu1 %v2343_v1 }
  0xee   : > { %745 = vadd.xlane.f32.xlu2 %v715_v4  ;;  %v2381_v4 = vld [vmem:[%s3523_s4] ss:$0 sm:$0xff] }
  0xef   : > { %699 = vadd.xlane.f32.xlu0 %v2349_v5 }
  0xf4   : > { %747 = vadd.xlane.f32.xlu1 %v716_v7 }
 0x110   : > { %v670_v10 = vpop.xlane.xlu0 %669 }
 0x111   : > { %v749_v11 = vmul.f32 0.03125, %v670_v10 }
 0x113   : > { %v781_v14 = vmul.f32 %v749_v11, %v749_v11  ;;  %v829_v63 = vsub.f32 %v2260_v55, %v749_v11 }
 0x117   : > { %v686_v12 = vpop.xlane.xlu1 %685 }
 0x118   : > { %v2355_v13 = vmul.f32 0.03125, %v686_v12  ;;  %v718_v51 = vpop.xlane.xlu0 %717 }
 0x119   : > { %v734_v15 = vpop.xlane.xlu2 %733  ;;  %v765_v16 = vmul.f32 0.03125, %v718_v51 }
 0x11a   : > { %v789_v18 = vmul.f32 %v2355_v13, %v2355_v13  ;;  %v773_v20 = vmul.f32 0.03125, %v734_v15 }
 0x11b   : > { %v797_v21 = vsub.f32 %v765_v16, %v781_v14 }
 0x11c   : > { %v805_v22 = vsub.f32 %v773_v20, %v789_v18  ;;  %v2397_v20 = vld [vmem:[%s3524_s5] ss:$0 sm:$0xff] }
 0x11d   : > { %v813_v23 = vmax.f32 %v797_v21, 0.0 }
 0x11e   : > { %v821_v29 = vmax.f32 %v805_v22, 0.0 }
 0x11f   : > { %v845_v24 = vadd.f32 1e-05, %v813_v23  ;;  %v672_v25 = vpop.xlane.xlu1 %671 }
 0x120   : > { %v688_v27 = vpop.xlane.xlu0 %687  ;;  %v2359_v30 = vmul.f32 0.03125, %v672_v25  ;;  %v2361_v32 = vadd.f32 1e-05, %v821_v29 }
 0x121   : > { %2025 = vrsqrt.f32 %v845_v24  ;;  %v674_v28 = vpop.xlane.xlu2 %673  ;;  %v2372_v57 = vmul.f32 0.03125, %v688_v27  ;;  %vm867_vm2 = vweird.f32 %v845_v24 }
 0x122   : > { %v782_v36 = vmul.f32 %v2359_v30, %v2359_v30  ;;  %v2365_v37 = vmul.f32 0.03125, %v674_v28  ;;  %2027 = vrsqrt.f32 %v2361_v32  ;;  %vm947_vm7 = vweird.f32 %v2361_v32 }
 0x123   : > { %v790_v0 = vmul.f32 %v2372_v57, %v2372_v57 }
 0x124   : > { %v783_v44 = vmul.f32 %v2365_v37, %v2365_v37 }
 0x127   : > { %v2026_v31 = vpop.eup %2025  ;;  %v720_v34 = vpop.xlane.xlu1 %719 }
 0x128   : > { %v862_v35 = vmul.f32 %v2026_v31, %v845_v24  ;;  %v766_v38 = vmul.f32 0.03125, %v720_v34  ;;  %v676_v39 = vpop.xlane.xlu0 %675  ;;  %vm868_vm1 = vweird.f32 %v2026_v31  ;;  %v2383_v7 = vpop.eup %2027 }
 0x129   : > { %v722_v40 = vpop.xlane.xlu2 %721  ;;  %vm869_vm3 = vmor %vm867_vm2, %vm868_vm1  ;;  %v942_v16 = vmul.f32 %v2383_v7, %v2361_v32  ;;  %v2402_v22 = vmul.f32 0.03125, %v676_v39  ;;  %vm948_vm4 = vweird.f32 %v2383_v7 }
 0x12a   : > { %v863_v43 = vmul.f32 %v2026_v31, %v862_v35  ;;  %v798_v45 = vsub.f32 %v766_v38, %v782_v36  ;;  %v767_v46 = vmul.f32 0.03125, %v722_v40  ;;  %vm2486_vm9 = vmor %vm947_vm7, %vm948_vm4 }
 0x12b   : > { %v784_v28 = vmul.f32 %v2402_v22, %v2402_v22  ;;  %v943_v39 = vmul.f32 %v2383_v7, %v942_v16 }
 0x12c   : > { %v864_v47 = vmul.f32 0.5, %v863_v43  ;;  %v814_v48 = vmax.f32 %v798_v45, 0.0  ;;  %v799_v50 = vsub.f32 %v767_v46, %v783_v44 }
 0x12e   : > { %v865_v52 = vsub.f32 1.5, %v864_v47  ;;  %v2370_v53 = vadd.f32 1e-05, %v814_v48  ;;  %v815_v54 = vmax.f32 %v799_v50, 0.0 }
 0x12f   : > { %v736_v58 = vpop.xlane.xlu1 %735 }
 0x130   : > { %v866_v61 = vmul.f32 %v2026_v31, %v865_v52  ;;  %2029 = vrsqrt.f32 %v2370_v53  ;;  %v738_v62 = vpop.xlane.xlu0 %737  ;;  %v774_v2 = vmul.f32 0.03125, %v736_v58  ;;  %v2385_v10 = vadd.f32 1e-05, %v815_v54 }
 0x131   : > { %v690_v3 = vpop.xlane.xlu2 %689  ;;  %v775_v51 = vmul.f32 0.03125, %v738_v62  ;;  %v944_v58 = vmul.f32 0.5, %v943_v39  ;;  %vm877_vm6 = vweird.f32 %v2370_v53 }
 0x132   : > { %v2387_v12 = vmul.f32 0.03125, %v690_v3  ;;  %v870_v14 = vsel %vm869_vm3, %v2026_v31, %v866_v61  ;;  %v806_v55 = vsub.f32 %v774_v2, %v790_v0  ;;  %2031 = vrsqrt.f32 %v2385_v10 }
 0x133   : > { %v1021_v11 = vmul.f32 %v870_v14, %v829_v63  ;;  %vm887_vm10 = vweird.f32 %v2385_v10 }
 0x134   : > { %3546 = vst [vmem:[#allocation7_spill] sm:$0xff] %v2387_v12  ;;  %v791_v15 = vmul.f32 %v2387_v12, %v2387_v12  ;;  %v822_v23 = vmax.f32 %v806_v55, 0.0 }
 0x135   : > { %v1041_v18 = vmul.f32 %v2381_v4, %v1021_v11 }
 0x136   : > { %v2399_v21 = vpop.eup %2029  ;;  %v807_v24 = vsub.f32 %v775_v51, %v791_v15  ;;  %v2413_v40 = vadd.f32 1e-05, %v822_v23 }
 0x137   : > { %v872_v25 = vmul.f32 %v2399_v21, %v2370_v53  ;;  %v724_v27 = vpop.xlane.xlu1 %723  ;;  %v2410_v38 = vadd.f32 %v2397_v20, %v1041_v18  ;;  %v945_v18 = vsub.f32 1.5, %v944_v58  ;;  %vm878_vm5 = vweird.f32 %v2399_v21 }
 0x138   : > { %v823_v29 = vmax.f32 %v807_v24, 0.0  ;;  %v768_v31 = vmul.f32 0.03125, %v724_v27  ;;  %v726_v34 = vpop.xlane.xlu0 %725  ;;  %v2419_v47 = vpop.eup %2031  ;;  %2033 = vrsqrt.f32 %v2413_v40  ;;  %vm2475_vm8 = vmor %vm877_vm6, %vm878_vm5  ;;  %vm957_vm13 = vweird.f32 %v2413_v40 }
 0x139   : > { %v873_v35 = vmul.f32 %v2399_v21, %v872_v25  ;;  %v678_v36 = vpop.xlane.xlu2 %677  ;;  %v769_v46 = vmul.f32 0.03125, %v726_v34  ;;  %v2424_v54 = vmul.f32 0.70710677, %v2410_v38  ;;  %v882_v62 = vmul.f32 %v2419_v47, %v2385_v10 }
 0x13a   : > { %v800_v43 = vsub.f32 %v768_v31, %v784_v28  ;;  %v2415_v44 = vmul.f32 0.03125, %v678_v36  ;;  %v2417_v45 = vadd.f32 1e-05, %v823_v29  ;;  %v837_v31 = vsub.f32 %v2264_v60, %v2355_v13 }
 0x13b   : > { %v874_v52 = vmul.f32 0.5, %v873_v35  ;;  %v1109_v2 = vmul.f32 %v2424_v54, %v2424_v54  ;;  %v883_v23 = vmul.f32 %v2419_v47, %v882_v62  ;;  %v830_v62 = vsub.f32 %v2274_v6, %v2359_v30 }
 0x13c   : > { %v816_v48 = vmax.f32 %v800_v43, 0.0  ;;  %v785_v50 = vmul.f32 %v2415_v44, %v2415_v44  ;;  %2035 = vrsqrt.f32 %v2417_v45  ;;  %vm888_vm11 = vweird.f32 %v2419_v47 }
 0x13d   : > { %v875_v3 = vsub.f32 1.5, %v874_v52  ;;  %v2436_v16 = vmin.f32 %v1109_v2, 16.0  ;;  %vm2534_vm14 = vmor %vm887_vm10, %vm888_vm11  ;;  %vm967_vm0 = vweird.f32 %v2417_v45 }
 0x13e   : > { %v801_v61 = vsub.f32 %v769_v46, %v785_v50  ;;  %v2430_v63 = vadd.f32 1e-05, %v816_v48  ;;  %v2440_v24 = vpop.eup %2033  ;;  %v946_v46 = vmul.f32 %v2383_v7, %v945_v18  ;;  %v884_v48 = vmul.f32 0.5, %v883_v23 }
 0x13f   : > { %v680_v0 = vpop.xlane.xlu1 %679  ;;  %3547 = vst [vmem:[#allocation8_spill] sm:$0xff] %v2440_v24  ;;  %v876_v34 = vmul.f32 %v2399_v21, %v875_v3  ;;  %v1111_v39 = vmul.f32 2.1237322e-06, %v2436_v16  ;;  %v1122_v43 = vmul.f32 3.8918573e-05, %v2436_v16  ;;  %v952_v60 = vmul.f32 %v2440_v24, %v2413_v40 }
 0x140   : > { %v817_v51 = vmax.f32 %v801_v61, 0.0  ;;  %v2434_v14 = vmul.f32 0.03125, %v680_v0  ;;  %v682_v11 = vpop.xlane.xlu0 %681  ;;  %2037 = vrsqrt.f32 %v2430_v63  ;;  %vm958_vm12 = vweird.f32 %v2440_v24 }
 0x141   : > { %v728_v55 = vpop.xlane.xlu2 %727  ;;  %v2446_v28 = vmul.f32 0.03125, %v682_v11  ;;  %v1112_v3 = vadd.f32 0.00028619796, %v1111_v39  ;;  %v880_v32 = vsel %vm2475_vm8, %v2399_v21, %v876_v34  ;;  %v1123_v30 = vadd.f32 0.001143296, %v1122_v43  ;;  %vm2583_vm3 = vmor %vm957_vm13, %vm958_vm12 }
 0x142   : > { %v770_v15 = vmul.f32 0.03125, %v728_v55  ;;  %v2442_v25 = vadd.f32 1e-05, %v817_v51  ;;  %v786_v27 = vmul.f32 %v2434_v14, %v2434_v14  ;;  %v2448_v29 = vpop.eup %2035  ;;  %v953_v23 = vmul.f32 %v2440_v24, %v952_v60 }
 0x143   : > { %3548 = vst [vmem:[#allocation9_spill] sm:$0xff] %v2448_v29  ;;  %v787_v36 = vmul.f32 %v2446_v28, %v2446_v28  ;;  %v962_v50 = vmul.f32 %v2448_v29, %v2417_v45  ;;  %v950_v21 = vsel %vm2486_vm9, %v2383_v7, %v946_v46  ;;  %v1113_v43 = vmul.f32 %v1112_v3, %v2436_v16 }
 0x144   : > { %v802_v35 = vsub.f32 %v770_v15, %v786_v27  ;;  %2039 = vrsqrt.f32 %v2442_v25  ;;  %v885_v15 = vsub.f32 1.5, %v884_v48  ;;  %v1022_v48 = vmul.f32 %v880_v32, %v830_v62 }
 0x145   : > { %v963_v27 = vmul.f32 %v2448_v29, %v962_v50  ;;  %v2511_v46 = vmul.f32 0.5, %v2410_v38  ;;  %v1124_v60 = vmul.f32 %v1123_v30, %v2436_v16  ;;  %v2520_v0 = vmul.f32 %v950_v21, %v837_v31 }
 0x146   : > { %v818_v52 = vmax.f32 %v802_v35, 0.0  ;;  %v2466_v61 = vpop.eup %2037  ;;  %v2515_v50 = vmul.f32 %v2419_v47, %v885_v15  ;;  %v1114_v15 = vadd.f32 0.0036580483, %v1113_v43  ;;  %vm968_vm15 = vweird.f32 %v2448_v29 }
 0x147   : > { %v730_v13 = vpop.xlane.xlu1 %729  ;;  %v892_v34 = vmul.f32 %v2466_v61, %v2430_v63  ;;  %v964_v3 = vmul.f32 0.5, %v963_v27  ;;  %vm897_vm1 = vweird.f32 %v2430_v63  ;;  %vm898_vm2 = vweird.f32 %v2466_v61  ;;  %vm2609_vm5 = vmor %vm967_vm0, %vm968_vm15 }
 0x148   : > { %v771_v58 = vmul.f32 0.03125, %v730_v13  ;;  %v2500_v35 = vadd.f32 1e-05, %v818_v52  ;;  %v954_v52 = vmul.f32 0.5, %v953_v23  ;;  %v1042_v23 = vmul.f32 %v2381_v4, %v1022_v48  ;;  %vm2629_vm7 = vmor %vm897_vm1, %vm898_vm2 }
 0x149   : > { %v740_v2 = vpop.xlane.xlu2 %739  ;;  %v893_v32 = vmul.f32 %v2466_v61, %v892_v34  ;;  %v965_v10 = vsub.f32 1.5, %v964_v3  ;;  %vm907_vm6 = vweird.f32 %v2442_v25 }
 0x14a   : > { %v803_v55 = vsub.f32 %v771_v58, %v787_v36  ;;  %v732_v6 = vpop.xlane.xlu0 %731  ;;  %v2505_v13 = vpop.eup %2039  ;;  %2041 = vrsqrt.f32 %v2500_v35  ;;  %v776_v30 = vmul.f32 0.03125, %v740_v2  ;;  %v1125_v2 = vadd.f32 0.014752088, %v1124_v60 }
 0x14b   : > { %v772_v21 = vmul.f32 0.03125, %v732_v6  ;;  %v955_v48 = vsub.f32 1.5, %v954_v52  ;;  %v894_v6 = vmul.f32 0.5, %v893_v32  ;;  %v1115_v52 = vmul.f32 %v1114_v15, %v2436_v16 }
 0x14c   : > { %v819_v39 = vmax.f32 %v803_v55, 0.0  ;;  %v902_v55 = vmul.f32 %v2505_v13, %v2442_v25  ;;  %v1126_v32 = vmul.f32 %v1125_v2, %v2436_v16  ;;  %v2571_v36 = vmul.f32 %v2448_v29, %v965_v10 }
 0x14d   : > { %v3558_v10 = vmov 0  ;;  %vm908_vm4 = vweird.f32 %v2505_v13  ;;  %vm917_vm8 = vweird.f32 %v2500_v35 }
 0x14e   : > { %v2518_v58 = vadd.f32 1e-05, %v819_v39  ;;  %v903_v60 = vmul.f32 %v2505_v13, %v902_v55  ;;  %3557 = vst [vmem:[#allocation12_spill] sm:$0xff] %v2571_v36  ;;  %v1116_v55 = vadd.f32 0.05243302, %v1115_v52  ;;  %v3559_v10 = vsel %vm2583_vm3, 4294967295, %v3558_v10  ;;  %vm2684_vm10 = vmor %vm907_vm6, %vm908_vm4 }
 0x14f   : > { %v692_v62 = vpop.xlane.xlu1 %691  ;;  %3560 = vst [vmem:[#allocation13_spill] sm:$0xff] %v3559_v10 }
 0x150   : > { %v2524_v38 = vmul.f32 0.03125, %v692_v62  ;;  %2043 = vrsqrt.f32 %v2518_v58  ;;  %v2557_v7 = vpop.eup %2041  ;;  %vm927_vm9 = vweird.f32 %v2518_v58 }
 0x151   : > { %v684_v11 = vpop.xlane.xlu2 %683  ;;  %vm918_vm11 = vweird.f32 %v2557_v7 }
 0x152   : > { %v792_v27 = vmul.f32 %v2524_v38, %v2524_v38  ;;  %v2540_v34 = vmul.f32 0.03125, %v684_v11  ;;  %v694_v39 = vpop.xlane.xlu0 %693  ;;  %vm2718_vm15 = vmor %vm917_vm8, %vm918_vm11 }
 0x153   : > { %v2554_v53 = vmul.f32 0.03125, %v694_v39 }
 0x154   : > { %v808_v62 = vsub.f32 %v776_v30, %v792_v27  ;;  %v788_v11 = vmul.f32 %v2540_v34, %v2540_v34  ;;  %v1062_v30 = vadd.f32 %v2397_v20, %v1042_v23  ;;  %v2563_v27 = vmul.f32 %v2440_v24, %v955_v48 }
 0x155   : > { %3555 = vst [vmem:[#allocation10_spill] sm:$0xff] %v2554_v53  ;;  %v793_v15 = vmul.f32 %v2554_v53, %v2554_v53  ;;  %v904_v48 = vmul.f32 0.5, %v903_v60  ;;  %v1127_v60 = vadd.f32 0.112945676, %v1126_v32  ;;  %v3561_v32 = vmov 0 }
 0x156   : > { %v824_v3 = vmax.f32 %v808_v62, 0.0  ;;  %v804_v18 = vsub.f32 %v772_v21, %v788_v11  ;;  %3556 = vst [vmem:[#allocation11_spill] sm:$0xff] %v2563_v27  ;;  %v895_v21 = vsub.f32 1.5, %v894_v6  ;;  %v2575_v23 = vpop.eup %2043  ;;  %v912_v11 = vmul.f32 %v2557_v7, %v2500_v35 }
 0x157   : > { %v742_v39 = vpop.xlane.xlu1 %741  ;;  %v3562_v32 = vsel %vm2609_vm5, 4294967295, %v3561_v32  ;;  %v905_v45 = vsub.f32 1.5, %v904_v48  ;;  %v1128_v52 = vmul.f32 %v1127_v60, %v2436_v16  ;;  %v3566_v48 = vsub.f32 %v2278_v9, %v2365_v37 }
 0x158   : > { %v2573_v62 = vadd.f32 1e-05, %v824_v3  ;;  %v820_v2 = vmax.f32 %v804_v18, 0.0  ;;  %v777_v43 = vmul.f32 0.03125, %v742_v39  ;;  %v2590_v3 = vmul.f32 0.70710677, %v1062_v30 }
 0x159   : > { %v696_v51 = vpop.xlane.xlu2 %695  ;;  %v2599_v12 = vmul.f32 %v2466_v61, %v895_v21  ;;  %3563 = vst [vmem:[#allocation14_spill] sm:$0xff] %v3562_v32  ;;  %v1117_v21 = vmul.f32 %v1116_v55, %v2436_v16  ;;  %v2635_v32 = vmul.f32 0.5, %v1062_v30  ;;  %v3567_v60 = vsel %vm2534_vm14, %v2419_v47, %v2515_v50 }
 0x15a   : > { %2045 = vrsqrt.f32 %v2573_v62  ;;  %v2588_v18 = vadd.f32 1e-05, %v820_v2  ;;  %v744_v6 = vpop.xlane.xlu0 %743  ;;  %v809_v39 = vsub.f32 %v777_v43, %v793_v15  ;;  %v2596_v5 = vmul.f32 0.03125, %v696_v51 }
 0x15b   : > { %v778_v40 = vmul.f32 0.03125, %v744_v6  ;;  %v922_v2 = vmul.f32 %v2575_v23, %v2518_v58  ;;  %v913_v51 = vmul.f32 %v2557_v7, %v912_v11  ;;  %v1149_v19 = vmul.f32 %v2590_v3, %v2590_v3 }
 0x15c   : > { %2047 = vrsqrt.f32 %v2588_v18  ;;  %v825_v43 = vmax.f32 %v809_v39, 0.0  ;;  %v794_v15 = vmul.f32 %v2596_v5, %v2596_v5  ;;  %v1023_v6 = vmul.f32 %v3567_v60, %v3566_v48 }
 0x15d   : > { %v914_v36 = vmul.f32 0.5, %v913_v51  ;;  %v1118_v50 = vadd.f32 0.18741608, %v1117_v21  ;;  %v2661_v48 = vmul.f32 %v2505_v13, %v905_v45  ;;  %vm928_vm12 = vweird.f32 %v2575_v23 }
 0x15e   : > { %v2633_v55 = vadd.f32 1e-05, %v825_v43  ;;  %v810_v39 = vsub.f32 %v778_v40, %v794_v15  ;;  %v923_v40 = vmul.f32 %v2575_v23, %v922_v2  ;;  %v1129_v15 = vadd.f32 0.4994258, %v1128_v52  ;;  %vm2759_vm0 = vmor %vm927_vm9, %vm928_vm12 }
 0x15f   : > { %v698_v27 = vpop.xlane.xlu1 %697  ;;  %v2665_v52 = vmin.f32 %v1149_v19, 16.0  ;;  %v915_v29 = vsub.f32 1.5, %v914_v36  ;;  %vm977_vm13 = vweird.f32 %v2573_v62  ;;  %vm937_vm14 = vweird.f32 %v2588_v18 }
 0x160   : > { %v2645_v63 = vpop.eup %2045  ;;  %v2652_v30 = vmul.f32 0.03125, %v698_v27  ;;  %v826_v60 = vmax.f32 %v810_v39, 0.0  ;;  %2049 = vrsqrt.f32 %v2633_v55  ;;  %v924_v43 = vmul.f32 0.5, %v923_v40 }
 0x161   : > { %v972_v37 = vmul.f32 %v2645_v63, %v2573_v62  ;;  %v746_v47 = vpop.xlane.xlu2 %745  ;;  %v1130_v19 = vmul.f32 %v1129_v15, %v2436_v16  ;;  %v2753_v35 = vmul.f32 %v2381_v4, %v2520_v0  ;;  %vm978_vm1 = vweird.f32 %v2645_v63 }
 0x162   : > { %3568 = vst [vmem:[#allocation15_spill] sm:$0xff] %v2652_v30  ;;  %v2658_v31 = vpop.eup %2047  ;;  %v795_v27 = vmul.f32 %v2652_v30, %v2652_v30  ;;  %v700_v2 = vpop.xlane.xlu0 %699  ;;  %v779_v21 = vmul.f32 0.03125, %v746_v47  ;;  %v2673_v45 = vadd.f32 1e-05, %v826_v60  ;;  %v1151_v60 = vmul.f32 2.1237322e-06, %v2665_v52  ;;  %vm2778_vm4 = vmor %vm977_vm13, %vm978_vm1 }
 0x163   : > { %v973_v51 = vmul.f32 %v2645_v63, %v972_v37  ;;  %v932_v9 = vmul.f32 %v2658_v31, %v2588_v18  ;;  %v2675_v39 = vmul.f32 0.03125, %v700_v2  ;;  %v1119_v37 = vmul.f32 %v1118_v50, %v2436_v16 }
 0x164   : > { %v811_v10 = vsub.f32 %v779_v21, %v795_v27  ;;  %v2699_v50 = vadd.f32 1.0, %v1130_v19  ;;  %v925_v27 = vsub.f32 1.5, %v924_v43  ;;  %2051 = vrsqrt.f32 %v2673_v45 }
 0x165   : > { %3569 = vst [vmem:[#allocation16_spill] sm:$0xff] %v2675_v39  ;;  %v933_v24 = vmul.f32 %v2658_v31, %v932_v9  ;;  %v796_v15 = vmul.f32 %v2675_v39, %v2675_v39  ;;  %v974_v25 = vmul.f32 0.5, %v973_v51  ;;  %v2706_v47 = vmul.f32 %v2557_v7, %v915_v29 }
 0x166   : > { %v827_v2 = vmax.f32 %v811_v10, 0.0  ;;  %v2703_v36 = vpop.eup %2049  ;;  %v1120_v56 = vadd.f32 1.1283791, %v1119_v37  ;;  %2053 = vrcp.f32 %v2699_v50  ;;  %v1043_v43 = vmul.f32 %v2381_v4, %v1023_v6 }
 0x167   : > { %v748_v9 = vpop.xlane.xlu1 %747  ;;  %v934_v53 = vmul.f32 0.5, %v933_v24  ;;  %v975_v19 = vsub.f32 1.5, %v974_v25  ;;  %v1152_v10 = vadd.f32 0.00028619796, %v1151_v60  ;;  %v2723_v29 = vmul.f32 %v2575_v23, %v925_v27 }
 0x168   : > { %v780_v21 = vmul.f32 0.03125, %v748_v9  ;;  %v1162_v9 = vmul.f32 3.8918573e-05, %v2665_v52  ;;  %v982_v6 = vmul.f32 %v2703_v36, %v2633_v55  ;;  %v2727_v37 = vadd.f32 1e-05, %v827_v2 }
 0x169   : > { %v935_v60 = vsub.f32 1.5, %v934_v53  ;;  %v2741_v39 = vadd.f32 %v2397_v20, %v1043_v43  ;;  %v3574_v2 = vsub.f32 %v2287_v17, %v2402_v22  ;;  %v3575_v53 = vsel %vm2629_vm7, %v2466_v61, %v2599_v12 }
 0x16a   : > { %v812_v51 = vsub.f32 %v780_v21, %v796_v15  ;;  %v1121_v21 = vmul.f32 %v1120_v56, %v2424_v54  ;;  %v2736_v16 = vpop.eup %2051  ;;  %v976_v17 = vmul.f32 %v2645_v63, %v975_v19  ;;  %v1153_v12 = vmul.f32 %v1152_v10, %v2665_v52 }
 0x16b   : > { %v1163_v22 = vadd.f32 0.001143296, %v1162_v9  ;;  %vm938_vm2 = vweird.f32 %v2658_v31  ;;  %v983_v58 = vmul.f32 %v2703_v36, %v982_v6  ;;  %2055 = vrsqrt.f32 %v2727_v37 }
 0x16c   : > { %v828_v15 = vmax.f32 %v812_v51, 0.0  ;;  %v1024_v51 = vmul.f32 %v3575_v53, %v3574_v2  ;;  %v2054_v56 = vpop.eup %2053  ;;  %v936_v0 = vmul.f32 %v2658_v31, %v935_v60  ;;  %v1154_v43 = vadd.f32 0.0036580483, %v1153_v12  ;;  %vm2797_vm7 = vmor %vm937_vm14, %vm938_vm2 }
 0x16d   : > { %v1133_v11 = vmul.f32 %v2054_v56, %v2699_v50  ;;  %v992_v10 = vmul.f32 %v2736_v16, %v2673_v45  ;;  %vm1137_vm6 = vweird.f32 %v2699_v50  ;;  %v1164_v6 = vmul.f32 %v1163_v22, %v2665_v52 }
 0x16e   : > { %v2738_v27 = vadd.f32 1e-05, %v828_v15  ;;  %v980_v15 = vsel %vm2778_vm4, %v2645_v63, %v976_v17  ;;  %v1141_v62 = vand.u32 2147483647, %v2699_v50  ;;  %v1155_v2 = vmul.f32 %v1154_v43, %v2665_v52 }
 0x16f   : > { %v1134_v60 = vsub.f32 1.0, %v1133_v11  ;;  %v1143_v12 = vand.u32 2147483648, %v2699_v50  ;;  %v1165_v22 = vadd.f32 0.014752088, %v1164_v6  ;;  %v2803_v9 = vmul.f32 0.70710677, %v2741_v39 }
 0x170   : > { %2057 = vrsqrt.f32 %v2738_v27  ;;  %v1044_v63 = vmul.f32 %v2381_v4, %v1024_v51  ;;  %v940_v17 = vsel %vm2797_vm7, %v2658_v31, %v936_v0  ;;  %v984_v11 = vmul.f32 0.5, %v983_v58 }
 0x171   : > { %v1135_v43 = vmul.f32 %v2054_v56, %v1134_v60  ;;  %vm1138_vm8 = vweird.f32 %v2054_v56  ;;  %v2809_v18 = vpop.eup %2055  ;;  %v993_v19 = vmul.f32 %v2736_v16, %v992_v10  ;;  %v1166_v61 = vmul.f32 %v1165_v22, %v2665_v52 }
 0x172   : > { %v1189_v6 = vmul.f32 %v2803_v9, %v2803_v9  ;;  %v2816_v25 = vadd.f32 %v2397_v20, %v1044_v63  ;;  %v3582_v31 = vsub.f32 %v2318_v42, %v2524_v38  ;;  %vm1142_vm9 = vcmp.eq.f32.partialorder %v1141_v62, 8.507059e+37  ;;  %vm1139_vm11 = vmor %vm1137_vm6, %vm1138_vm8 }
 0x173   : > { %v1136_v0 = vadd.f32 %v2054_v56, %v1135_v43  ;;  %v1156_v60 = vadd.f32 0.05243302, %v1155_v2  ;;  %v3583_v10 = vsub.f32 %v2325_v49, %v2540_v34  ;;  %v1144_v22 = vor.u32 1.1754944e-38, %v1143_v12 }
 0x174   : > { %v2823_v58 = vmul.f32 %v980_v15, %v3582_v31  ;;  %v1167_v63 = vadd.f32 0.112945676, %v1166_v61  ;;  %v2830_v30 = vmin.f32 %v1189_v6, 16.0  ;;  %v985_v1 = vsub.f32 1.5, %v984_v11 }
 0x175   : > { %v1028_v53 = vmul.f32 %v940_v17, %v3583_v10  ;;  %v1002_v42 = vmul.f32 %v2809_v18, %v2727_v37  ;;  %v1140_v38 = vsel %vm1139_vm11, %v2054_v56, %v1136_v0  ;;  %v2835_v15 = vmul.f32 0.70710677, %v2816_v25 }
 0x176   : > { %v2818_v51 = vpop.eup %2057  ;;  %v994_v62 = vmul.f32 0.5, %v993_v19  ;;  %v1145_v34 = vsel %vm1142_vm9, %v1144_v22, %v1140_v38  ;;  %v1168_v50 = vmul.f32 %v1167_v63, %v2665_v52  ;;  %v1157_v61 = vmul.f32 %v1156_v60, %v2665_v52 }
 0x177   : > { %v1012_v49 = vmul.f32 %v2818_v51, %v2738_v27  ;;  %v1146_v2 = vmul.f32 %v1145_v34, %v1121_v21  ;;  %v1191_v12 = vmul.f32 2.1237322e-06, %v2830_v30  ;;  %v1202_v17 = vmul.f32 3.8918573e-05, %v2830_v30 }
 0x178   : > { %v2844_v11 = vmul.f32 %v2381_v4, %v1028_v53  ;;  %v1169_v56 = vadd.f32 0.4994258, %v1168_v50  ;;  %v1229_v43 = vmul.f32 %v2835_v15, %v2835_v15  ;;  %v3584_v19 = vsub.f32 %v2299_v26, %v2415_v44 }
 0x179   : > { %v3585_v21 = vsel %vm2684_vm10, %v2505_v13, %v2661_v48  ;;  %v1003_v31 = vmul.f32 %v2809_v18, %v1002_v42  ;;  %v1972_v0 = vclamps-f32 %v1146_v2, 1.0  ;;  %v1192_v60 = vadd.f32 0.00028619796, %v1191_v12 }
 0x17a   : > { %v1025_v6 = vmul.f32 %v3585_v21, %v3584_v19  ;;  %v1203_v10 = vadd.f32 0.001143296, %v1202_v17  ;;  %v995_v53 = vsub.f32 1.5, %v994_v62  ;;  %v1013_v22 = vmul.f32 %v2818_v51, %v1012_v49 }
 0x17b   : > { %v1170_v63 = vmul.f32 %v1169_v56, %v2665_v52  ;;  %v2859_v38 = vmin.f32 %v1229_v43, 16.0  ;;  %v1749_v34 = vadd.f32 1.0, %v1972_v0  ;;  %v1158_v26 = vadd.f32 0.18741608, %v1157_v61 }
 0x17c   : > { %v1193_v44 = vmul.f32 %v1192_v60, %v2830_v30  ;;  %v1204_v40 = vmul.f32 %v1203_v10, %v2830_v30  ;;  %v1045_v62 = vmul.f32 %v2381_v4, %v1025_v6  ;;  %v2868_v50 = vmul.f32 0.5, %v1003_v31 }
 0x17d   : > { %v2863_v13 = vadd.f32 1.0, %v1170_v63  ;;  %v1231_v48 = vmul.f32 2.1237322e-06, %v2859_v38  ;;  %v1242_v42 = vmul.f32 3.8918573e-05, %v2859_v38  ;;  %v1765_v49 = vmul.f32 %v1749_v34, %v2511_v46 }
 0x17e   : > { %v1194_v2 = vadd.f32 0.0036580483, %v1193_v44  ;;  %v1205_v12 = vadd.f32 0.014752088, %v1204_v40  ;;  %v2872_v61 = vmul.f32 %v2703_v36, %v985_v1  ;;  %v2875_v17 = vmul.f32 %v2736_v16, %v995_v53 }
 0x17f   : > { %2059 = vrcp.f32 %v2863_v13  ;;  %v2879_v56 = vmul.f32 0.5, %v2741_v39  ;;  %v2881_v43 = vmul.f32 0.5, %v1013_v22  ;;  %1781 = vxpose.xlu2.b32.start [1/16] %v1765_v49, 128  ;;  %v1232_v21 = vadd.f32 0.00028619796, %v1231_v48 }
 0x180   : > { %v1195_v19 = vmul.f32 %v1194_v2, %v2830_v30  ;;  %v1206_v46 = vmul.f32 %v1205_v12, %v2830_v30  ;;  %v1159_v6 = vmul.f32 %v1158_v26, %v2665_v52  ;;  %v1243_v1 = vadd.f32 0.001143296, %v1242_v42 }
 0x181   : > { %v2887_v31 = vadd.f32 %v2397_v20, %v1045_v62  ;;  %v3586_v0 = vsub.f32 %v2307_v33, %v2434_v14  ;;  %v3587_v39 = vsel %vm2718_vm15, %v2557_v7, %v2706_v47  ;;  %v1005_v10 = vsub.f32 1.5, %v2868_v50 }
 0x182   : > { %v1196_v53 = vadd.f32 0.05243302, %v1195_v19  ;;  %v1207_v22 = vadd.f32 0.112945676, %v1206_v46  ;;  %v1233_v63 = vmul.f32 %v1232_v21, %v2859_v38  ;;  %v2900_v52 = vmul.f32 0.5, %v2816_v25 }
 0x183   : > { %v1026_v60 = vmul.f32 %v3587_v39, %v3586_v0  ;;  %v1244_v34 = vmul.f32 %v1243_v1, %v2859_v38  ;;  %v2904_v26 = vmul.f32 0.70710677, %v2887_v31  ;;  %v1015_v14 = vsub.f32 1.5, %v2881_v43 }
 0x184   : > { %v1197_v7 = vmul.f32 %v1196_v53, %v2830_v30  ;;  %v1208_v47 = vmul.f32 %v1207_v22, %v2830_v30  ;;  %v1234_v24 = vadd.f32 0.0036580483, %v1233_v63  ;;  %v1160_v40 = vadd.f32 1.1283791, %v1159_v6 }
 0x185   : > { %v1046_v33 = vmul.f32 %v2381_v4, %v1026_v60  ;;  %v2060_v44 = vpop.eup %2059  ;;  %v1245_v48 = vadd.f32 0.014752088, %v1244_v34  ;;  %v1269_v25 = vmul.f32 %v2904_v26, %v2904_v26  ;;  %v1181_v49 = vand.u32 2147483647, %v2863_v13 }
 0x186   : > { %v1173_v62 = vmul.f32 %v2060_v44, %v2863_v13  ;;  %v1198_v2 = vadd.f32 0.18741608, %v1197_v7  ;;  %v1209_v12 = vadd.f32 0.4994258, %v1208_v47  ;;  %v1183_v19 = vand.u32 2147483648, %v2863_v13 }
 0x187   : > { %v2913_v42 = vadd.f32 %v2397_v20, %v1046_v33  ;;  %v1235_v46 = vmul.f32 %v1234_v24, %v2859_v38  ;;  %v1246_v21 = vmul.f32 %v1245_v48, %v2859_v38  ;;  %v2920_v6 = vmin.f32 %v1269_v25, 16.0 }
 0x188   : > { %v1174_v1 = vsub.f32 1.0, %v1173_v62  ;;  %v1210_v0 = vmul.f32 %v1209_v12, %v2830_v30  ;;  %v3588_v60 = vsub.f32 %v2314_v41, %v2446_v28  ;;  %v3589_v53 = vsel %vm2759_vm0, %v2575_v23, %v2723_v29 }
 0x189   : > { %v2924_v39 = vmul.f32 0.70710677, %v2913_v42  ;;  %vm1178_vm10 = vweird.f32 %v2060_v44  ;;  %v1236_v63 = vadd.f32 0.05243302, %v1235_v46  ;;  %v1247_v34 = vadd.f32 0.112945676, %v1246_v21 }
 0x18a   : > { %v1027_v22 = vmul.f32 %v3589_v53, %v3588_v60  ;;  %v1271_v33 = vmul.f32 2.1237322e-06, %v2920_v6  ;;  %v1175_v7 = vmul.f32 %v2060_v44, %v1174_v1  ;;  %v1199_v47 = vmul.f32 %v1198_v2, %v2830_v30 }
 0x18b   : > { %v2936_v24 = vadd.f32 1.0, %v1210_v0  ;;  %v1282_v48 = vmul.f32 3.8918573e-05, %v2920_v6  ;;  %v1237_v41 = vmul.f32 %v1236_v63, %v2859_v38  ;;  %v1248_v28 = vmul.f32 %v1247_v34, %v2859_v38 }
 0x18c   : > { %v1272_v54 = vadd.f32 0.00028619796, %v1271_v33  ;;  %v1309_v23 = vmul.f32 %v2924_v39, %v2924_v39  ;;  %v1161_v29 = vmul.f32 %v1160_v40, %v2590_v3  ;;  %v1176_v25 = vadd.f32 %v2060_v44, %v1175_v7 }
 0x18d   : > { %vm1177_vm12 = vweird.f32 %v2863_v13  ;;  %2061 = vrcp.f32 %v2936_v24  ;;  %vm1182_vm14 = vcmp.eq.f32.partialorder %v1181_v49, 8.507059e+37  ;;  %v1184_v30 = vor.u32 1.1754944e-38, %v1183_v19 }
 0x18e   : > { %vm1179_vm13 = vmor %vm1177_vm12, %vm1178_vm10  ;;  %v1238_v62 = vadd.f32 0.18741608, %v1237_v41  ;;  %v1273_v2 = vmul.f32 %v1272_v54, %v2920_v6  ;;  %v1249_v46 = vadd.f32 0.4994258, %v1248_v28  ;;  %v1283_v21 = vadd.f32 0.001143296, %v1282_v48 }
 0x18f   : > { %v1180_v12 = vsel %vm1179_vm13, %v2060_v44, %v1176_v25  ;;  %v2948_v1 = vmin.f32 %v1309_v23, 16.0  ;;  %v1200_v60 = vadd.f32 1.1283791, %v1199_v47  ;;  %v1047_v3 = vmul.f32 %v2381_v4, %v1027_v22 }
 0x190   : > { %v1185_v0 = vsel %vm1182_vm14, %v1184_v30, %v1180_v12  ;;  %v2953_v13 = vadd.f32 %v2397_v20, %v2753_v35  ;;  %v1250_v49 = vmul.f32 %v1249_v46, %v2859_v38  ;;  %v1274_v19 = vadd.f32 0.0036580483, %v1273_v2 }
 0x191   : > { %v1186_v40 = vmul.f32 %v1185_v0, %v1161_v29  ;;  %v1284_v53 = vmul.f32 %v1283_v21, %v2920_v6  ;;  %v1221_v44 = vand.u32 2147483647, %v2936_v24  ;;  %v1239_v63 = vmul.f32 %v1238_v62, %v2859_v38 }
 0x192   : > { %v1311_v34 = vmul.f32 2.1237322e-06, %v2948_v1  ;;  %v1322_v33 = vmul.f32 3.8918573e-05, %v2948_v1  ;;  %v2961_v22 = vadd.f32 1.0, %v1250_v49  ;;  %v1275_v35 = vmul.f32 %v1274_v19, %v2920_v6 }
 0x193   : > { %v2062_v7 = vpop.eup %2061  ;;  %v1973_v4 = vclamps-f32 %v1186_v40, 1.0  ;;  %v1285_v47 = vadd.f32 0.014752088, %v1284_v53  ;;  %v1201_v48 = vmul.f32 %v1200_v60, %v2803_v9  ;;  %vm1217_vm15 = vweird.f32 %v2936_v24 }
 0x194   : > { %v1213_v41 = vmul.f32 %v2062_v7, %v2936_v24  ;;  %v1312_v28 = vadd.f32 0.00028619796, %v1311_v34  ;;  %v1223_v38 = vand.u32 2147483648, %v2936_v24  ;;  %2063 = vrcp.f32 %v2961_v22 }
 0x195   : > { %v1750_v54 = vadd.f32 1.0, %v1973_v4  ;;  %v2970_v23 = vadd.f32 %v2397_v20, %v1047_v3  ;;  %v1240_v25 = vadd.f32 1.1283791, %v1239_v63  ;;  %v1276_v30 = vadd.f32 0.05243302, %v1275_v35 }
 0x196   : > { %v1214_v29 = vsub.f32 1.0, %v1213_v41  ;;  %v1286_v62 = vmul.f32 %v1285_v47, %v2920_v6  ;;  %vm2974_vm0 = vcmp.eq.f32.partialorder %v1221_v44, 8.507059e+37  ;;  %v1313_v12 = vmul.f32 %v1312_v28, %v2948_v1 }
 0x197   : > { %v1766_v9 = vmul.f32 %v1750_v54, %v2635_v32  ;;  %v1323_v46 = vadd.f32 0.001143296, %v1322_v33  ;;  %vm1218_vm1 = vweird.f32 %v2062_v7  ;;  %v1277_v0 = vmul.f32 %v1276_v30, %v2920_v6 }
 0x198   : > { %v1215_v21 = vmul.f32 %v2062_v7, %v1214_v29  ;;  %v1287_v60 = vadd.f32 0.112945676, %v1286_v62  ;;  %v1224_v3 = vor.u32 1.1754944e-38, %v1223_v38  ;;  %v1314_v40 = vadd.f32 0.0036580483, %v1313_v12  ;;  %vm1219_vm4 = vmor %vm1217_vm15, %vm1218_vm1 }
 0x199   : > { %1782 = vxpose.xlu2.b32.cont [2/16] %v1766_v9, 128  ;;  %v1324_v49 = vmul.f32 %v1323_v46, %v2948_v1  ;;  %v2982_v19 = vmul.f32 0.70710677, %v2970_v23  ;;  %v1241_v53 = vmul.f32 %v1240_v25, %v2835_v15  ;;  %vm1257_vm2 = vweird.f32 %v2961_v22 }
 0x19a   : > { %v1216_v32 = vadd.f32 %v2062_v7, %v1215_v21  ;;  %v1288_v44 = vmul.f32 %v1287_v60, %v2920_v6  ;;  %v2064_v63 = vpop.eup %2063  ;;  %v1278_v34 = vadd.f32 0.18741608, %v1277_v0  ;;  %v1315_v33 = vmul.f32 %v1314_v40, %v2948_v1 }
 0x19b   : > { %v1325_v4 = vadd.f32 0.014752088, %v1324_v49  ;;  %v1349_v35 = vmul.f32 %v2982_v19, %v2982_v19  ;;  %v1253_v41 = vmul.f32 %v2064_v63, %v2961_v22  ;;  %v1261_v15 = vand.u32 2147483647, %v2961_v22 }
 0x19c   : > { %v1220_v47 = vsel %vm1219_vm4, %v2062_v7, %v1216_v32  ;;  %v1263_v28 = vand.u32 2147483648, %v2961_v22  ;;  %v1289_v38 = vadd.f32 0.4994258, %v1288_v44  ;;  %v1316_v24 = vadd.f32 0.05243302, %v1315_v33 }
 0x19d   : > { %v1225_v54 = vsel %vm2974_vm0, %v1224_v3, %v1220_v47  ;;  %v1326_v29 = vmul.f32 %v1325_v4, %v2948_v1  ;;  %v1254_v30 = vsub.f32 1.0, %v1253_v41  ;;  %v2998_v62 = vmin.f32 %v1349_v35, 16.0 }
 0x19e   : > { %v1226_v25 = vmul.f32 %v1225_v54, %v1201_v48  ;;  %v3002_v7 = vadd.f32 %v2397_v20, %v2844_v11  ;;  %v1279_v9 = vmul.f32 %v1278_v34, %v2920_v6  ;;  %v1290_v12 = vmul.f32 %v1289_v38, %v2920_v6 }
 0x19f   : > { %v1317_v46 = vmul.f32 %v1316_v24, %v2948_v1  ;;  %v1327_v2 = vadd.f32 0.112945676, %v1326_v29  ;;  %v1255_v0 = vmul.f32 %v2064_v63, %v1254_v30  ;;  %vm1258_vm6 = vweird.f32 %v2064_v63 }
 0x1a0   : > { %v1974_v21 = vclamps-f32 %v1226_v25, 1.0  ;;  %v1351_v60 = vmul.f32 2.1237322e-06, %v2998_v62  ;;  %vm3008_vm7 = vcmp.eq.f32.partialorder %v1261_v15, 8.507059e+37  ;;  %v3012_v3 = vadd.f32 1.0, %v1290_v12  ;;  %vm1259_vm8 = vmor %vm1257_vm2, %vm1258_vm6 }
 0x1a1   : > { %v1318_v20 = vadd.f32 0.18741608, %v1317_v46  ;;  %v1328_v11 = vmul.f32 %v1327_v2, %v2948_v1  ;;  %v1256_v49 = vadd.f32 %v2064_v63, %v1255_v0  ;;  %v1362_v32 = vmul.f32 3.8918573e-05, %v2998_v62  ;;  %v3596_v46 = vld [vmem:[#allocation8_spill] sm:$0xff]  ;;  %v3597_v2 = vld [vmem:[#allocation11_spill] sm:$0xff] }
 0x1a2   : > { %v1751_v40 = vadd.f32 1.0, %v1974_v21  ;;  %v1352_v6 = vadd.f32 0.00028619796, %v1351_v60  ;;  %v1264_v44 = vor.u32 1.1754944e-38, %v1263_v28  ;;  %v1280_v34 = vadd.f32 1.1283791, %v1279_v9 }
 0x1a3   : > { %2065 = vrcp.f32 %v3012_v3  ;;  %v3020_v33 = vmul.f32 0.70710677, %v3002_v7  ;;  %v1260_v35 = vsel %vm1259_vm8, %v2064_v63, %v1256_v49  ;;  %v1319_v47 = vmul.f32 %v1318_v20, %v2948_v1 }
 0x1a4   : > { %v1767_v4 = vmul.f32 %v1751_v40, %v2879_v56  ;;  %v1329_v41 = vadd.f32 0.4994258, %v1328_v11  ;;  %v1265_v15 = vsel %vm3008_vm7, %v1264_v44, %v1260_v35  ;;  %v1301_v54 = vand.u32 2147483647, %v3012_v3 }
 0x1a5   : > { %v1303_v22 = vand.u32 2147483648, %v3012_v3  ;;  %v1353_v28 = vmul.f32 %v1352_v6, %v2998_v62  ;;  %v1266_v38 = vmul.f32 %v1265_v15, %v1241_v53  ;;  %v1320_v24 = vadd.f32 1.1283791, %v1319_v47 }
 0x1a6   : > { %1783 = vxpose.xlu2.b32.cont [3/16] %v1767_v4, 128  ;;  %v1330_v29 = vmul.f32 %v1329_v41, %v2948_v1  ;;  %v1363_v25 = vadd.f32 0.001143296, %v1362_v32  ;;  %v1389_v63 = vmul.f32 %v3020_v33, %v3020_v33  ;;  %v3033_v30 = vmul.f32 0.70710677, %v2953_v13 }
 0x1a7   : > { %v1354_v56 = vadd.f32 0.0036580483, %v1353_v28  ;;  %v3594_v9 = vsub.f32 %v2276_v8, %v2372_v57  ;;  %v3598_v21 = vsel %vm2583_vm3, %v3596_v46, %v3597_v2  ;;  %v1975_v0 = vclamps-f32 %v1266_v38, 1.0  ;;  %v3605_v46 = vld [vmem:[#allocation9_spill] sm:$0xff]  ;;  %v3606_v2 = vld [vmem:[#allocation12_spill] sm:$0xff] }
 0x1a8   : > { %v3044_v1 = vmul.f32 0.5, %v2887_v31  ;;  %v3046_v60 = vadd.f32 1.0, %v1330_v29  ;;  %v1364_v48 = vmul.f32 %v1363_v25, %v2998_v62  ;;  %v1281_v11 = vmul.f32 %v1280_v34, %v2904_v26  ;;  %v3068_v34 = vld [vmem:[%s3523_s4] ss:$0 sm:$0xff] }
 0x1a9   : > { %v1030_v53 = vmul.f32 %v3598_v21, %v3594_v9  ;;  %v2066_v20 = vpop.eup %2065  ;;  %vm1297_vm9 = vweird.f32 %v3012_v3  ;;  %v1355_v8 = vmul.f32 %v1354_v56, %v2998_v62  ;;  %v3052_v57 = vmin.f32 %v1389_v63, 16.0  ;;  %v3601_v56 = vld [vmem:[#allocation3_spill] sm:$0xff] }
 0x1aa   : > { %v1752_v40 = vadd.f32 1.0, %v1975_v0  ;;  %v1293_v49 = vmul.f32 %v2066_v20, %v3012_v3  ;;  %vm3055_vm3 = vcmp.eq.f32.partialorder %v1301_v54, 8.507059e+37  ;;  %2067 = vrcp.f32 %v3046_v60  ;;  %v3602_v63 = vld [vmem:[#allocation7_spill] sm:$0xff] }
 0x1ab   : > { %v1429_v31 = vmul.f32 %v3033_v30, %v3033_v30  ;;  %v1304_v32 = vor.u32 1.1754944e-38, %v1303_v22  ;;  %v3063_v26 = vmul.f32 %v1320_v24, %v2924_v39  ;;  %v1356_v44 = vadd.f32 0.05243302, %v1355_v8 }
 0x1ac   : > { %v1050_v4 = vmul.f32 %v3068_v34, %v1030_v53  ;;  %v1768_v35 = vmul.f32 %v1752_v40, %v2900_v52  ;;  %v1294_v47 = vsub.f32 1.0, %v1293_v49  ;;  %v1365_v41 = vadd.f32 0.014752088, %v1364_v48 }
 0x1ad   : > { %v1391_v15 = vmul.f32 2.1237322e-06, %v3052_v57  ;;  %vm1298_vm11 = vweird.f32 %v2066_v20  ;;  %v1341_v54 = vand.u32 2147483647, %v3046_v60  ;;  %v1357_v39 = vmul.f32 %v1356_v44, %v2998_v62 }
 0x1ae   : > { %v1402_v22 = vmul.f32 3.8918573e-05, %v3052_v57  ;;  %vm987_vm10 = vweird.f32 %v2633_v55  ;;  %vm988_vm12 = vweird.f32 %v2703_v36  ;;  %1784 = vxpose.xlu2.b32.cont [4/16] %v1768_v35, 128  ;;  %v1295_v28 = vmul.f32 %v2066_v20, %v1294_v47  ;;  %vm1299_vm2 = vmor %vm1297_vm9, %vm1298_vm11 }
 0x1af   : > { %v1366_v38 = vmul.f32 %v1365_v41, %v2998_v62  ;;  %v1392_v52 = vadd.f32 0.00028619796, %v1391_v15  ;;  %v3079_v24 = vmin.f32 %v1429_v31, 16.0  ;;  %vm997_vm13 = vweird.f32 %v2673_v45  ;;  %vm3134_vm7 = vmor %vm987_vm10, %vm988_vm12  ;;  %v3614_v45 = vld [vmem:[#allocation16_spill] sm:$0xff] }
 0x1b0   : > { %vm998_vm14 = vweird.f32 %v2736_v16  ;;  %vm1337_vm15 = vweird.f32 %v3046_v60  ;;  %v1343_v29 = vand.u32 2147483648, %v3046_v60  ;;  %v1403_v25 = vadd.f32 0.001143296, %v1402_v22  ;;  %v2068_v0 = vpop.eup %2067 }
 0x1b1   : > { %v3603_v9 = vsub.f32 %v3601_v56, %v3602_v63  ;;  %v3607_v21 = vsel %vm2609_vm5, %v3605_v46, %v3606_v2  ;;  %vm1017_vm0 = vweird.f32 %v2738_v27  ;;  %vm1018_vm1 = vweird.f32 %v2818_v51  ;;  %vm3147_vm8 = vmor %vm997_vm13, %vm998_vm14 }
 0x1b2   : > { %v1296_v48 = vadd.f32 %v2066_v20, %v1295_v28  ;;  %v1367_v8 = vadd.f32 0.112945676, %v1366_v38  ;;  %v1393_v40 = vmul.f32 %v1392_v52, %v3052_v57  ;;  %v1431_v49 = vmul.f32 2.1237322e-06, %v3079_v24  ;;  %vm3170_vm9 = vmor %vm1017_vm0, %vm1018_vm1 }
 0x1b3   : > { %v3093_v53 = vmul.f32 %v3607_v21, %v3603_v9  ;;  %v1333_v31 = vmul.f32 %v2068_v0, %v3046_v60  ;;  %vm3103_vm5 = vcmp.eq.f32.partialorder %v1341_v54, 8.507059e+37  ;;  %v1358_v35 = vadd.f32 0.18741608, %v1357_v39  ;;  %v3114_v54 = vld [vmem:[%s3524_s5] ss:$0 sm:$0xff] }
 0x1b4   : > { %v1404_v47 = vmul.f32 %v1403_v25, %v3052_v57  ;;  %v1300_v41 = vsel %vm1299_vm2, %v2066_v20, %v1296_v48  ;;  %v1368_v15 = vmul.f32 %v1367_v8, %v2998_v62  ;;  %v1394_v22 = vadd.f32 0.0036580483, %v1393_v40 }
 0x1b5   : > { %v1432_v28 = vadd.f32 0.00028619796, %v1431_v49  ;;  %v1305_v38 = vsel %vm3055_vm3, %v1304_v32, %v1300_v41  ;;  %v1334_v52 = vsub.f32 1.0, %v1333_v31  ;;  %v3117_v56 = vadd.f32 %v3114_v54, %v1050_v4 }
 0x1b6   : > { %v1405_v3 = vadd.f32 0.014752088, %v1404_v47  ;;  %v1306_v39 = vmul.f32 %v1305_v38, %v1281_v11  ;;  %v1369_v25 = vadd.f32 0.4994258, %v1368_v15  ;;  %v1395_v20 = vmul.f32 %v1394_v22, %v3052_v57  ;;  %v3615_v38 = vld [vmem:[#allocation6_spill] sm:$0xff] }
 0x1b7   : > { %v1433_v63 = vmul.f32 %v1432_v28, %v3079_v24  ;;  %v1335_v9 = vmul.f32 %v2068_v0, %v1334_v52  ;;  %vm1338_vm4 = vweird.f32 %v2068_v0  ;;  %v1442_v32 = vmul.f32 3.8918573e-05, %v3079_v24 }
 0x1b8   : > { %v1406_v6 = vmul.f32 %v1405_v3, %v3052_v57  ;;  %v1976_v12 = vclamps-f32 %v1306_v39, 1.0  ;;  %v1344_v46 = vor.u32 1.1754944e-38, %v1343_v29  ;;  %v1370_v2 = vmul.f32 %v1369_v25, %v2998_v62  ;;  %vm1339_vm6 = vmor %vm1337_vm15, %vm1338_vm4 }
 0x1b9   : > { %v1396_v21 = vadd.f32 0.05243302, %v1395_v20  ;;  %v1336_v48 = vadd.f32 %v2068_v0, %v1335_v9  ;;  %v1434_v8 = vadd.f32 0.0036580483, %v1433_v63  ;;  %v1443_v11 = vadd.f32 0.001143296, %v1442_v32 }
 0x1ba   : > { %v1407_v4 = vadd.f32 0.112945676, %v1406_v6  ;;  %v1753_v40 = vadd.f32 1.0, %v1976_v12  ;;  %v1359_v49 = vmul.f32 %v1358_v35, %v2998_v62  ;;  %v3127_v31 = vadd.f32 1.0, %v1370_v2 }
 0x1bb   : > { %v1397_v47 = vmul.f32 %v1396_v21, %v3052_v57  ;;  %v1340_v41 = vsel %vm1339_vm6, %v2068_v0, %v1336_v48  ;;  %v1444_v60 = vmul.f32 %v1443_v11, %v3079_v24  ;;  %v3141_v22 = vmul.f32 0.70710677, %v3117_v56 }
 0x1bc   : > { %v1408_v15 = vmul.f32 %v1407_v4, %v3052_v57  ;;  %v3154_v55 = vmul.f32 %v2818_v51, %v1015_v14  ;;  %v1769_v0 = vmul.f32 %v1753_v40, %v3044_v1  ;;  %v1345_v35 = vsel %vm3103_vm5, %v1344_v46, %v1340_v41 }
 0x1bd   : > { %2069 = vrcp.f32 %v3127_v31  ;;  %v3162_v28 = vmul.f32 %v3068_v34, %v2823_v58  ;;  %v844_v52 = vsub.f32 %v3615_v38, %v3614_v45  ;;  %v1346_v14 = vmul.f32 %v1345_v35, %v3063_v26 }
 0x1be   : > { %v1435_v1 = vmul.f32 %v1434_v8, %v3079_v24  ;;  %1785 = vxpose.xlu2.b32.cont [5/16] %v1769_v0, 128  ;;  %v1398_v44 = vadd.f32 0.18741608, %v1397_v47  ;;  %v1409_v3 = vadd.f32 0.4994258, %v1408_v15  ;;  %v1445_v58 = vadd.f32 0.014752088, %v1444_v60 }
 0x1bf   : > { %v1469_v39 = vmul.f32 %v3141_v22, %v3141_v22  ;;  %v990_v27 = vsel %vm3134_vm7, %v2703_v36, %v2872_v61  ;;  %v1000_v25 = vsel %vm3147_vm8, %v2736_v16, %v2875_v17  ;;  %v1977_v26 = vclamps-f32 %v1346_v14, 1.0  ;;  %v3629_v36 = vld [vmem:[#allocation15_spill] sm:$0xff] }
 0x1c0   : > { %v1360_v20 = vadd.f32 1.1283791, %v1359_v49  ;;  %v3189_v63 = vmul.f32 %v2809_v18, %v1005_v10  ;;  %v1020_v9 = vsel %vm3170_vm9, %v2818_v51, %v3154_v55  ;;  %v1410_v6 = vmul.f32 %v1409_v3, %v3052_v57 }
 0x1c1   : > { %v1446_v32 = vmul.f32 %v1445_v58, %v3079_v24  ;;  %v1082_v12 = vmul.f32 0.5, %v2913_v42  ;;  %v1754_v46 = vadd.f32 1.0, %v1977_v26  ;;  %v1436_v2 = vadd.f32 0.05243302, %v1435_v1 }
 0x1c2   : > { %v3198_v21 = vmin.f32 %v1469_v39, 16.0  ;;  %v1399_v50 = vmul.f32 %v1398_v44, %v3052_v57  ;;  %v3201_v10 = vadd.f32 1.0, %v1410_v6  ;;  %v1051_v8 = vmul.f32 %v3068_v34, %v3093_v53 }
 0x1c3   : > { %v2070_v48 = vpop.eup %2069  ;;  %v1447_v4 = vadd.f32 0.112945676, %v1446_v32  ;;  %v3206_v11 = vmul.f32 0.5, %v2970_v23  ;;  %v1361_v40 = vmul.f32 %v1360_v20, %v2982_v19  ;;  %v3211_v49 = vmul.f32 0.5, %v3002_v7 }
 0x1c4   : > { %v1373_v42 = vmul.f32 %v2070_v48, %v3127_v31  ;;  %v1770_v47 = vmul.f32 %v1754_v46, %v1082_v12  ;;  %v1381_v41 = vand.u32 2147483647, %v3127_v31  ;;  %v1383_v57 = vand.u32 2147483648, %v3127_v31 }
 0x1c5   : > { %2071 = vrcp.f32 %v3201_v10  ;;  %v1437_v53 = vmul.f32 %v1436_v2, %v3079_v24  ;;  %v1448_v23 = vmul.f32 %v1447_v4, %v3079_v24  ;;  %v1471_v60 = vmul.f32 2.1237322e-06, %v3198_v21 }
 0x1c6   : > { %v1374_v15 = vsub.f32 1.0, %v1373_v42  ;;  %1786 = vxpose.xlu2.b32.cont [6/16] %v1770_v47, 128  ;;  %vm1377_vm3 = vweird.f32 %v3127_v31  ;;  %v1400_v19 = vadd.f32 1.1283791, %v1399_v50  ;;  %v1482_v7 = vmul.f32 3.8918573e-05, %v3198_v21 }
 0x1c7   : > { %v3222_v0 = vadd.f32 %v3114_v54, %v1051_v8  ;;  %vm1378_vm11 = vweird.f32 %v2070_v48  ;;  %v1449_v14 = vadd.f32 0.4994258, %v1448_v23  ;;  %v1472_v1 = vadd.f32 0.00028619796, %v1471_v60 }
 0x1c8   : > { %v1375_v35 = vmul.f32 %v2070_v48, %v1374_v15  ;;  %vm3224_vm10 = vcmp.eq.f32.partialorder %v1381_v41, 8.507059e+37  ;;  %v1384_v3 = vor.u32 1.1754944e-38, %v1383_v57  ;;  %v1483_v58 = vadd.f32 0.001143296, %v1482_v7  ;;  %vm1379_vm12 = vmor %vm1377_vm3, %vm1378_vm11 }
 0x1c9   : > { %v3229_v39 = vmul.f32 0.70710677, %v3222_v0  ;;  %v1438_v20 = vadd.f32 0.18741608, %v1437_v53  ;;  %v1450_v6 = vmul.f32 %v1449_v14, %v3079_v24  ;;  %v1473_v32 = vmul.f32 %v1472_v1, %v3198_v21 }
 0x1ca   : > { %v1376_v26 = vadd.f32 %v2070_v48, %v1375_v35  ;;  %v1401_v46 = vmul.f32 %v1400_v19, %v3020_v33  ;;  %v1421_v2 = vand.u32 2147483647, %v3201_v10  ;;  %v1484_v50 = vmul.f32 %v1483_v58, %v3198_v21 }
 0x1cb   : > { %v2072_v12 = vpop.eup %2071  ;;  %v1509_v4 = vmul.f32 %v3229_v39, %v3229_v39  ;;  %v1423_v47 = vand.u32 2147483648, %v3201_v10  ;;  %v3242_v41 = vadd.f32 1.0, %v1450_v6  ;;  %v1474_v57 = vadd.f32 0.0036580483, %v1473_v32 }
 0x1cc   : > { %v1380_v8 = vsel %vm1379_vm12, %v2070_v48, %v1376_v26  ;;  %v1413_v42 = vmul.f32 %v2072_v12, %v3201_v10  ;;  %v1485_v15 = vadd.f32 0.014752088, %v1484_v50  ;;  %v1439_v60 = vmul.f32 %v1438_v20, %v3079_v24 }
 0x1cd   : > { %v1385_v31 = vsel %vm3224_vm10, %v1384_v3, %v1380_v8  ;;  %v3246_v33 = vmin.f32 %v1509_v4, 16.0  ;;  %2073 = vrcp.f32 %v3242_v41  ;;  %vm1418_vm13 = vweird.f32 %v2072_v12 }
 0x1ce   : > { %v1386_v53 = vmul.f32 %v1385_v31, %v1361_v40  ;;  %v1414_v23 = vsub.f32 1.0, %v1413_v42  ;;  %v1475_v48 = vmul.f32 %v1474_v57, %v3198_v21  ;;  %v1486_v19 = vmul.f32 %v1485_v15, %v3198_v21 }
 0x1cf   : > { %v3254_v7 = vadd.f32 %v3114_v54, %v3162_v28  ;;  %vm1007_vm14 = vweird.f32 %v2727_v37  ;;  %vm1008_vm15 = vweird.f32 %v2809_v18  ;;  %v1511_v14 = vmul.f32 2.1237322e-06, %v3246_v33 }
 0x1d0   : > { %v1978_v35 = vclamps-f32 %v1386_v53, 1.0  ;;  %v1415_v40 = vmul.f32 %v2072_v12, %v1414_v23  ;;  %v1522_v24 = vmul.f32 3.8918573e-05, %v3246_v33  ;;  %vm1417_vm0 = vweird.f32 %v3201_v10  ;;  %vm3301_vm6 = vmor %vm1007_vm14, %vm1008_vm15 }
 0x1d1   : > { %vm3261_vm1 = vcmp.eq.f32.partialorder %v1421_v2, 8.507059e+37  ;;  %v1424_v44 = vor.u32 1.1754944e-38, %v1423_v47  ;;  %v1487_v3 = vadd.f32 0.112945676, %v1486_v19  ;;  %v1512_v26 = vadd.f32 0.00028619796, %v1511_v14  ;;  %vm1419_vm2 = vmor %vm1417_vm0, %vm1418_vm13 }
 0x1d2   : > { %v1755_v28 = vadd.f32 1.0, %v1978_v35  ;;  %v1416_v58 = vadd.f32 %v2072_v12, %v1415_v40  ;;  %v1523_v20 = vadd.f32 0.001143296, %v1522_v24  ;;  %v1440_v6 = vadd.f32 1.1283791, %v1439_v60  ;;  %v3622_v35 = vld [vmem:[#allocation4_spill] sm:$0xff] }
 0x1d3   : > { %v1476_v32 = vadd.f32 0.05243302, %v1475_v48  ;;  %v1488_v50 = vmul.f32 %v1487_v3, %v3198_v21  ;;  %v3268_v4 = vmul.f32 0.70710677, %v3254_v7  ;;  %v2074_v10 = vpop.eup %2073  ;;  %v1513_v42 = vmul.f32 %v1512_v26, %v3246_v33  ;;  %v3623_v40 = vld [vmem:[#allocation10_spill] sm:$0xff] }
 0x1d4   : > { %v1771_v2 = vmul.f32 %v1755_v28, %v3206_v11  ;;  %v1420_v8 = vsel %vm1419_vm2, %v2072_v12, %v1416_v58  ;;  %v1524_v47 = vmul.f32 %v1523_v20, %v3246_v33  ;;  %v1453_v57 = vmul.f32 %v2074_v10, %v3242_v41 }
 0x1d5   : > { %v1425_v31 = vsel %vm3261_vm1, %v1424_v44, %v1420_v8  ;;  %vm1457_vm5 = vweird.f32 %v3242_v41  ;;  %v1463_v15 = vand.u32 2147483648, %v3242_v41  ;;  %v1489_v23 = vadd.f32 0.4994258, %v1488_v50 }
 0x1d6   : > { %1787 = vxpose.xlu2.b32.cont [7/16] %v1771_v2, 128  ;;  %v1426_v53 = vmul.f32 %v1425_v31, %v1401_v46  ;;  %v1514_v60 = vadd.f32 0.0036580483, %v1513_v42  ;;  %v1525_v48 = vadd.f32 0.014752088, %v1524_v47  ;;  %v1454_v11 = vsub.f32 1.0, %v1453_v57 }
 0x1d7   : > { %v1477_v12 = vmul.f32 %v1476_v32, %v3198_v21  ;;  %v1549_v19 = vmul.f32 %v3268_v4, %v3268_v4  ;;  %v3624_v14 = vsub.f32 %v3622_v35, %v3623_v40  ;;  %v1490_v46 = vmul.f32 %v1489_v23, %v3198_v21 }
 0x1d8   : > { %v1979_v1 = vclamps-f32 %v1426_v53, 1.0  ;;  %v1515_v44 = vmul.f32 %v1514_v60, %v3246_v33  ;;  %v1526_v3 = vmul.f32 %v1525_v48, %v3246_v33  ;;  %v1455_v28 = vmul.f32 %v2074_v10, %v1454_v11 }
 0x1d9   : > { %v1033_v24 = vmul.f32 %v990_v27, %v3624_v14  ;;  %vm1458_vm4 = vweird.f32 %v2074_v10  ;;  %v1461_v58 = vand.u32 2147483647, %v3242_v41  ;;  %v3293_v26 = vmin.f32 %v1549_v19, 16.0 }
 0x1da   : > { %v1756_v20 = vadd.f32 1.0, %v1979_v1  ;;  %v3295_v32 = vadd.f32 1.0, %v1490_v46  ;;  %v1516_v29 = vadd.f32 0.05243302, %v1515_v44  ;;  %v1527_v50 = vadd.f32 0.112945676, %v1526_v3  ;;  %vm1459_vm7 = vmor %vm1457_vm5, %vm1458_vm4 }
 0x1db   : > { %v1456_v61 = vadd.f32 %v2074_v10, %v1455_v28  ;;  %v1478_v27 = vadd.f32 0.18741608, %v1477_v12  ;;  %v1551_v2 = vmul.f32 2.1237322e-06, %v3293_v26  ;;  %v1562_v8 = vmul.f32 3.8918573e-05, %v3293_v26 }
 0x1dc   : > { %v1772_v42 = vmul.f32 %v1756_v20, %v3211_v49  ;;  %v1464_v47 = vor.u32 1.1754944e-38, %v1463_v15  ;;  %2075 = vrcp.f32 %v3295_v32  ;;  %v1053_v37 = vmul.f32 %v3068_v34, %v1033_v24 }
 0x1dd   : > { %v1441_v31 = vmul.f32 %v1440_v6, %v3033_v30  ;;  %v1460_v57 = vsel %vm1459_vm7, %v2074_v10, %v1456_v61  ;;  %vm1462_vm3 = vcmp.eq.f32.partialorder %v1461_v58, 8.507059e+37  ;;  %v1528_v53 = vmul.f32 %v1527_v50, %v3246_v33  ;;  %v3628_v50 = vld [vmem:[#allocation5_spill] sm:$0xff] }
 0x1de   : > { %1788 = vxpose.xlu2.b32.cont [8/16] %v1772_v42, 128  ;;  %v1465_v23 = vsel %vm1462_vm3, %v1464_v47, %v1460_v57  ;;  %v1517_v60 = vmul.f32 %v1516_v29, %v3246_v33  ;;  %v1552_v48 = vadd.f32 0.00028619796, %v1551_v2  ;;  %v1563_v49 = vadd.f32 0.001143296, %v1562_v8 }
 0x1df   : > { %v1010_v41 = vsel %vm3301_vm6, %v2809_v18, %v3189_v63  ;;  %v1466_v15 = vmul.f32 %v1465_v23, %v1441_v31  ;;  %v1479_v11 = vmul.f32 %v1478_v27, %v3198_v21  ;;  %v1529_v12 = vadd.f32 0.4994258, %v1528_v53 }
 0x1e0   : > { %v1553_v30 = vmul.f32 %v1552_v48, %v3293_v26  ;;  %v1564_v6 = vmul.f32 %v1563_v49, %v3293_v26  ;;  %v3323_v10 = vadd.f32 %v3114_v54, %v1053_v37  ;;  %v3627_v19 = vsub.f32 %v2335_v59, %v2596_v5 }
 0x1e1   : > { %v3341_v63 = vmul.f32 %v1020_v9, %v844_v52  ;;  %v1085_v21 = vmul.f32 0.5, %v2953_v13  ;;  %v1980_v35 = vclamps-f32 %v1466_v15, 1.0  ;;  %v1530_v59 = vmul.f32 %v1529_v12, %v3246_v33 }
 0x1e2   : > { %v1034_v18 = vmul.f32 %v1000_v25, %v3627_v19  ;;  %v2076_v5 = vpop.eup %2075  ;;  %v1518_v62 = vadd.f32 0.18741608, %v1517_v60  ;;  %v1554_v40 = vadd.f32 0.0036580483, %v1553_v30  ;;  %v1565_v16 = vadd.f32 0.014752088, %v1564_v6 }
 0x1e3   : > { %v1757_v25 = vadd.f32 1.0, %v1980_v35  ;;  %v3347_v45 = vmul.f32 0.5, %v3117_v56  ;;  %v1480_v38 = vadd.f32 1.1283791, %v1479_v11  ;;  %v1493_v51 = vmul.f32 %v2076_v5, %v3295_v32 }
 0x1e4   : > { %v1054_v17 = vmul.f32 %v3068_v34, %v1034_v18  ;;  %v3350_v55 = vadd.f32 1.0, %v1530_v59  ;;  %v1555_v13 = vmul.f32 %v1554_v40, %v3293_v26  ;;  %v1566_v52 = vmul.f32 %v1565_v16, %v3293_v26 }
 0x1e5   : > { %v3355_v43 = vmul.f32 0.70710677, %v3323_v10  ;;  %v1773_v9 = vmul.f32 %v1757_v25, %v1085_v21  ;;  %v1494_v14 = vsub.f32 1.0, %v1493_v51  ;;  %v1501_v24 = vand.u32 2147483647, %v3295_v32 }
 0x1e6   : > { %v3359_v1 = vadd.f32 %v3114_v54, %v1054_v17  ;;  %vm1498_vm8 = vweird.f32 %v2076_v5  ;;  %v1503_v56 = vand.u32 2147483648, %v3295_v32  ;;  %v1519_v46 = vmul.f32 %v1518_v62, %v3246_v33 }
 0x1e7   : > { %2077 = vrcp.f32 %v3350_v55  ;;  %1789 = vxpose.xlu2.b32.cont [9/16] %v1773_v9, 128  ;;  %v1495_v44 = vmul.f32 %v2076_v5, %v1494_v14  ;;  %v1556_v3 = vadd.f32 0.05243302, %v1555_v13  ;;  %v1567_v28 = vadd.f32 0.112945676, %v1566_v52 }
 0x1e8   : > { %v1589_v58 = vmul.f32 %v3355_v43, %v3355_v43  ;;  %v1481_v20 = vmul.f32 %v1480_v38, %v3141_v22  ;;  %vm1497_vm9 = vweird.f32 %v3295_v32  ;;  %v3369_v29 = vmul.f32 0.70710677, %v3359_v1 }
 0x1e9   : > { %v3630_v61 = vsub.f32 %v3628_v50, %v3629_v36  ;;  %v1496_v27 = vadd.f32 %v2076_v5, %v1495_v44  ;;  %v1557_v2 = vmul.f32 %v1556_v3, %v3293_v26  ;;  %v1568_v8 = vmul.f32 %v1567_v28, %v3293_v26  ;;  %vm1499_vm11 = vmor %vm1497_vm9, %vm1498_vm8 }
 0x1ea   : > { %v3376_v42 = vmin.f32 %v1589_v58, 16.0  ;;  %vm1502_vm10 = vcmp.eq.f32.partialorder %v1501_v24, 8.507059e+37  ;;  %v1504_v22 = vor.u32 1.1754944e-38, %v1503_v56  ;;  %v1520_v47 = vadd.f32 1.1283791, %v1519_v46 }
 0x1eb   : > { %v1035_v33 = vmul.f32 %v1010_v41, %v3630_v61  ;;  %v1629_v32 = vmul.f32 %v3369_v29, %v3369_v29  ;;  %v1500_v37 = vsel %vm1499_vm11, %v2076_v5, %v1496_v27  ;;  %v1558_v31 = vadd.f32 0.18741608, %v1557_v2 }
 0x1ec   : > { %v1569_v57 = vadd.f32 0.4994258, %v1568_v8  ;;  %v1591_v53 = vmul.f32 2.1237322e-06, %v3376_v42  ;;  %v1505_v60 = vsel %vm1502_vm10, %v1504_v22, %v1500_v37  ;;  %v1541_v48 = vand.u32 2147483647, %v3350_v55 }
 0x1ed   : > { %v2078_v23 = vpop.eup %2077  ;;  %v1602_v49 = vmul.f32 3.8918573e-05, %v3376_v42  ;;  %v3384_v41 = vmin.f32 %v1629_v32, 16.0  ;;  %v1506_v15 = vmul.f32 %v1505_v60, %v1481_v20  ;;  %v1543_v12 = vand.u32 2147483648, %v3350_v55 }
 0x1ee   : > { %v1533_v11 = vmul.f32 %v2078_v23, %v3350_v55  ;;  %v1055_v30 = vmul.f32 %v3068_v34, %v1035_v33  ;;  %v1570_v6 = vmul.f32 %v1569_v57, %v3293_v26  ;;  %v1592_v19 = vadd.f32 0.00028619796, %v1591_v53 }
 0x1ef   : > { %v1603_v18 = vadd.f32 0.001143296, %v1602_v49  ;;  %v1631_v21 = vmul.f32 2.1237322e-06, %v3384_v41  ;;  %v1981_v35 = vclamps-f32 %v1506_v15, 1.0  ;;  %v1559_v5 = vmul.f32 %v1558_v31, %v3293_v26 }
 0x1f0   : > { %v1534_v59 = vsub.f32 1.0, %v1533_v11  ;;  %v1642_v62 = vmul.f32 3.8918573e-05, %v3384_v41  ;;  %v3393_v40 = vadd.f32 1.0, %v1570_v6  ;;  %v1593_v16 = vmul.f32 %v1592_v19, %v3376_v42 }
 0x1f1   : > { %v1604_v17 = vmul.f32 %v1603_v18, %v3376_v42  ;;  %v1632_v25 = vadd.f32 0.00028619796, %v1631_v21  ;;  %v1758_v38 = vadd.f32 1.0, %v1981_v35  ;;  %vm1538_vm12 = vweird.f32 %v2078_v23 }
 0x1f2   : > { %v1535_v51 = vmul.f32 %v2078_v23, %v1534_v59  ;;  %v1643_v13 = vadd.f32 0.001143296, %v1642_v62  ;;  %v1521_v52 = vmul.f32 %v1520_v47, %v3229_v39  ;;  %vm1537_vm13 = vweird.f32 %v3350_v55 }
 0x1f3   : > { %2079 = vrcp.f32 %v3393_v40  ;;  %v3401_v26 = vadd.f32 %v3114_v54, %v1055_v30  ;;  %v1774_v9 = vmul.f32 %v1758_v38, %v3347_v45  ;;  %v1594_v24 = vadd.f32 0.0036580483, %v1593_v16  ;;  %vm1539_vm14 = vmor %vm1537_vm13, %vm1538_vm12 }
 0x1f4   : > { %v1536_v14 = vadd.f32 %v2078_v23, %v1535_v51  ;;  %v1605_v56 = vadd.f32 0.014752088, %v1604_v17  ;;  %v1544_v46 = vor.u32 1.1754944e-38, %v1543_v12  ;;  %v1560_v44 = vadd.f32 1.1283791, %v1559_v5 }
 0x1f5   : > { %v1633_v3 = vmul.f32 %v1632_v25, %v3384_v41  ;;  %v1644_v28 = vmul.f32 %v1643_v13, %v3384_v41  ;;  %1790 = vxpose.xlu2.b32.cont [10/16] %v1774_v9, 128  ;;  %vm1542_vm15 = vcmp.eq.f32.partialorder %v1541_v48, 8.507059e+37  ;;  %v1595_v55 = vmul.f32 %v1594_v24, %v3376_v42 }
 0x1f6   : > { %v1540_v39 = vsel %vm1539_vm14, %v2078_v23, %v1536_v14  ;;  %v1606_v58 = vmul.f32 %v1605_v56, %v3376_v42  ;;  %v3409_v36 = vmul.f32 0.70710677, %v3401_v26  ;;  %v1056_v2 = vmul.f32 %v3068_v34, %v3341_v63 }
 0x1f7   : > { %v1545_v20 = vsel %vm1542_vm15, %v1544_v46, %v1540_v39  ;;  %v1634_v50 = vadd.f32 0.0036580483, %v1633_v3  ;;  %v1645_v45 = vadd.f32 0.014752088, %v1644_v28  ;;  %v1596_v33 = vadd.f32 0.05243302, %v1595_v55 }
 0x1f8   : > { %v1546_v61 = vmul.f32 %v1545_v20, %v1521_v52  ;;  %v1607_v27 = vadd.f32 0.112945676, %v1606_v58  ;;  %v1087_v22 = vmul.f32 0.5, %v3222_v0  ;;  %v1561_v47 = vmul.f32 %v1560_v44, %v3268_v4 }
 0x1f9   : > { %v2080_v8 = vpop.eup %2079  ;;  %v1646_v32 = vmul.f32 %v1645_v45, %v3384_v41  ;;  %v1669_v37 = vmul.f32 %v3409_v36, %v3409_v36  ;;  %v1581_v53 = vand.u32 2147483647, %v3393_v40  ;;  %v1635_v23 = vmul.f32 %v1634_v50, %v3384_v41 }
 0x1fa   : > { %v1982_v31 = vclamps-f32 %v1546_v61, 1.0  ;;  %v1573_v57 = vmul.f32 %v2080_v8, %v3393_v40  ;;  %v1597_v60 = vmul.f32 %v1596_v33, %v3376_v42  ;;  %v1608_v34 = vmul.f32 %v1607_v27, %v3376_v42 }
 0x1fb   : > { %v1647_v63 = vadd.f32 0.112945676, %v1646_v32  ;;  %v3423_v0 = vmin.f32 %v1669_v37, 16.0  ;;  %v1583_v49 = vand.u32 2147483648, %v3393_v40  ;;  %v3427_v15 = vadd.f32 %v3114_v54, %v1056_v2 }
 0x1fc   : > { %v1759_v4 = vadd.f32 1.0, %v1982_v31  ;;  %v1574_v48 = vsub.f32 1.0, %v1573_v57  ;;  %vm1578_vm0 = vweird.f32 %v2080_v8  ;;  %v1609_v11 = vadd.f32 0.4994258, %v1608_v34 }
 0x1fd   : > { %v1648_v12 = vmul.f32 %v1647_v63, %v3384_v41  ;;  %v1671_v30 = vmul.f32 2.1237322e-06, %v3423_v0  ;;  %v1636_v18 = vadd.f32 0.05243302, %v1635_v23  ;;  %v1682_v21 = vmul.f32 3.8918573e-05, %v3423_v0 }
 0x1fe   : > { %v1775_v6 = vmul.f32 %v1759_v4, %v1087_v22  ;;  %v1575_v19 = vmul.f32 %v2080_v8, %v1574_v48  ;;  %v1598_v35 = vadd.f32 0.18741608, %v1597_v60  ;;  %v1610_v59 = vmul.f32 %v1609_v11, %v3376_v42 }
 0x1ff   : > { %v1649_v5 = vadd.f32 0.4994258, %v1648_v12  ;;  %v1672_v62 = vadd.f32 0.00028619796, %v1671_v30  ;;  %vm1577_vm1 = vweird.f32 %v3393_v40  ;;  %v1683_v54 = vadd.f32 0.001143296, %v1682_v21 }
 0x200   : > { %1791 = vxpose.xlu2.b32.cont [11/16] %v1775_v6, 128  ;;  %v1576_v16 = vadd.f32 %v2080_v8, %v1575_v19  ;;  %v3435_v17 = vmul.f32 0.70710677, %v3427_v15  ;;  %vm1579_vm2 = vmor %vm1577_vm1, %vm1578_vm0  ;;  %vm1582_vm5 = vcmp.eq.f32.partialorder %v1581_v53, 8.507059e+37  ;;  %v1584_v25 = vor.u32 1.1754944e-38, %v1583_v49 }
 0x201   : > { %v1611_v38 = vadd.f32 1.0, %v1610_v59  ;;  %v1650_v51 = vmul.f32 %v1649_v5, %v3384_v41  ;;  %v1637_v52 = vmul.f32 %v1636_v18, %v3384_v41  ;;  %v1684_v9 = vmul.f32 %v1683_v54, %v3423_v0 }
 0x202   : > { %v1580_v13 = vsel %vm1579_vm2, %v2080_v8, %v1576_v16  ;;  %v1709_v14 = vmul.f32 %v3435_v17, %v3435_v17  ;;  %v1599_v24 = vmul.f32 %v1598_v35, %v3376_v42  ;;  %v1673_v56 = vmul.f32 %v1672_v62, %v3423_v0 }
 0x203   : > { %v1585_v40 = vsel %vm1582_vm5, %v1584_v25, %v1580_v13  ;;  %2081 = vrcp.f32 %v1611_v38  ;;  %v3445_v44 = vadd.f32 1.0, %v1650_v51  ;;  %v1685_v3 = vadd.f32 0.014752088, %v1684_v9 }
 0x204   : > { %v1586_v46 = vmul.f32 %v1585_v40, %v1561_v47  ;;  %v3447_v28 = vmin.f32 %v1709_v14, 16.0  ;;  %v1638_v55 = vadd.f32 0.18741608, %v1637_v52  ;;  %v1088_v58 = vmul.f32 0.5, %v3254_v7 }
 0x205   : > { %2083 = vrcp.f32 %v3445_v44  ;;  %v1600_v20 = vadd.f32 1.1283791, %v1599_v24  ;;  %v1674_v50 = vadd.f32 0.0036580483, %v1673_v56  ;;  %v1686_v42 = vmul.f32 %v1685_v3, %v3423_v0 }
 0x206   : > { %v1983_v39 = vclamps-f32 %v1586_v46, 1.0  ;;  %v1711_v61 = vmul.f32 2.1237322e-06, %v3447_v28  ;;  %v1722_v33 = vmul.f32 3.8918573e-05, %v3447_v28  ;;  %v1639_v22 = vmul.f32 %v1638_v55, %v3384_v41 }
 0x207   : > { %v1687_v47 = vadd.f32 0.112945676, %v1686_v42  ;;  %v1621_v32 = vand.u32 2147483647, %v1611_v38  ;;  %v1675_v37 = vmul.f32 %v1674_v50, %v3423_v0  ;;  %v1601_v53 = vmul.f32 %v1600_v20, %v3355_v43 }
 0x208   : > { %v1760_v45 = vadd.f32 1.0, %v1983_v39  ;;  %v1712_v31 = vadd.f32 0.00028619796, %v1711_v61  ;;  %v1723_v7 = vadd.f32 0.001143296, %v1722_v33  ;;  %vm1617_vm4 = vweird.f32 %v1611_v38 }
 0x209   : > { %v2082_v27 = vpop.eup %2081  ;;  %v1688_v60 = vmul.f32 %v1687_v47, %v3423_v0  ;;  %v1623_v34 = vand.u32 2147483648, %v1611_v38  ;;  %vm3461_vm7 = vcmp.eq.f32.partialorder %v1621_v32, 8.507059e+37  ;;  %v1640_v12 = vadd.f32 1.1283791, %v1639_v22 }
 0x20a   : > { %v1776_v2 = vmul.f32 %v1760_v45, %v1088_v58  ;;  %v1613_v8 = vmul.f32 %v2082_v27, %v1611_v38  ;;  %vm1618_vm6 = vweird.f32 %v2082_v27  ;;  %v1713_v48 = vmul.f32 %v1712_v31, %v3447_v28 }
 0x20b   : > { %v2084_v57 = vpop.eup %2083  ;;  %v1689_v41 = vadd.f32 0.4994258, %v1688_v60  ;;  %v1724_v49 = vmul.f32 %v1723_v7, %v3447_v28  ;;  %v1676_v30 = vadd.f32 0.05243302, %v1675_v37  ;;  %v1663_v19 = vand.u32 2147483648, %v3445_v44  ;;  %vm1619_vm3 = vmor %vm1617_vm4, %vm1618_vm6 }
 0x20c   : > { %1792 = vxpose.xlu2.b32.cont [12/16] %v1776_v2, 128  ;;  %v1614_v23 = vsub.f32 1.0, %v1613_v8  ;;  %v1653_v63 = vmul.f32 %v2084_v57, %v3445_v44  ;;  %v1624_v35 = vor.u32 1.1754944e-38, %v1623_v34  ;;  %vm1658_vm8 = vweird.f32 %v2084_v57 }
 0x20d   : > { %v1690_v18 = vmul.f32 %v1689_v41, %v3423_v0  ;;  %v1725_v21 = vadd.f32 0.014752088, %v1724_v49  ;;  %v1661_v5 = vand.u32 2147483647, %v3445_v44  ;;  %v1714_v54 = vadd.f32 0.0036580483, %v1713_v48 }
 0x20e   : > { %v1615_v4 = vmul.f32 %v2082_v27, %v1614_v23  ;;  %v1654_v43 = vsub.f32 1.0, %v1653_v63  ;;  %vm1657_vm9 = vweird.f32 %v3445_v44  ;;  %v1677_v52 = vmul.f32 %v1676_v30, %v3423_v0 }
 0x20f   : > { %v1691_v16 = vadd.f32 1.0, %v1690_v18  ;;  %v1726_v25 = vmul.f32 %v1725_v21, %v3447_v28  ;;  %vm1659_vm11 = vmor %vm1657_vm9, %vm1658_vm8  ;;  %v1664_v9 = vor.u32 1.1754944e-38, %v1663_v19  ;;  %v1641_v14 = vmul.f32 %v1640_v12, %v3369_v29 }
 0x210   : > { %v1616_v6 = vadd.f32 %v2082_v27, %v1615_v4  ;;  %v1655_v59 = vmul.f32 %v2084_v57, %v1654_v43  ;;  %vm1662_vm10 = vcmp.eq.f32.partialorder %v1661_v5, 8.507059e+37  ;;  %v1715_v3 = vmul.f32 %v1714_v54, %v3447_v28 }
 0x211   : > { %2085 = vrcp.f32 %v1691_v16  ;;  %v1727_v24 = vadd.f32 0.112945676, %v1726_v25  ;;  %v1678_v55 = vadd.f32 0.18741608, %v1677_v52  ;;  %v1089_v44 = vmul.f32 0.5, %v3323_v10 }
 0x212   : > { %v1620_v62 = vsel %vm1619_vm3, %v2082_v27, %v1616_v6  ;;  %v1656_v13 = vadd.f32 %v2084_v57, %v1655_v59  ;;  %v1716_v33 = vadd.f32 0.05243302, %v1715_v3  ;;  %v1703_v47 = vand.u32 2147483648, %v1691_v16 }
 0x213   : > { %v1625_v51 = vsel %vm3461_vm7, %v1624_v35, %v1620_v62  ;;  %v1728_v58 = vmul.f32 %v1727_v24, %v3447_v28  ;;  %v1679_v29 = vmul.f32 %v1678_v55, %v3423_v0  ;;  %v1701_v7 = vand.u32 2147483647, %v1691_v16 }
 0x214   : > { %v1626_v38 = vmul.f32 %v1625_v51, %v1601_v53  ;;  %v1660_v40 = vsel %vm1659_vm11, %v2084_v57, %v1656_v13  ;;  %v1717_v32 = vmul.f32 %v1716_v33, %v3447_v28  ;;  %v1090_v57 = vmul.f32 0.5, %v3359_v1 }
 0x215   : > { %v1665_v46 = vsel %vm1662_vm10, %v1664_v9, %v1660_v40  ;;  %v1729_v50 = vadd.f32 0.4994258, %v1728_v58  ;;  %v1680_v31 = vadd.f32 1.1283791, %v1679_v29  ;;  %vm1697_vm13 = vweird.f32 %v1691_v16 }
 0x216   : > { %v1984_v56 = vclamps-f32 %v1626_v38, 1.0  ;;  %v1666_v39 = vmul.f32 %v1665_v46, %v1641_v14  ;;  %v1704_v23 = vor.u32 1.1754944e-38, %v1703_v47  ;;  %v1718_v60 = vadd.f32 0.18741608, %v1717_v32 }
 0x217   : > { %v2086_v45 = vpop.eup %2085  ;;  %v1730_v2 = vmul.f32 %v1729_v50, %v3447_v28  ;;  %v1681_v34 = vmul.f32 %v1680_v31, %v3409_v36  ;;  %vm1702_vm15 = vcmp.eq.f32.partialorder %v1701_v7, 8.507059e+37  ;;  %v1091_v1 = vmul.f32 0.5, %v3401_v26 }
 0x218   : > { %v1761_v20 = vadd.f32 1.0, %v1984_v56  ;;  %v1985_v61 = vclamps-f32 %v1666_v39, 1.0  ;;  %v1693_v27 = vmul.f32 %v2086_v45, %v1691_v16  ;;  %vm1698_vm12 = vweird.f32 %v2086_v45 }
 0x219   : > { %v1731_v37 = vadd.f32 1.0, %v1730_v2  ;;  %vm1699_vm14 = vmor %vm1697_vm13, %vm1698_vm12  ;;  %v1719_v49 = vmul.f32 %v1718_v60, %v3447_v28  ;;  %v1092_v54 = vmul.f32 0.5, %v3427_v15 }
 0x21a   : > { %v1777_v42 = vmul.f32 %v1761_v20, %v1089_v44  ;;  %v1694_v8 = vsub.f32 1.0, %v1693_v27  ;;  %v1762_v22 = vadd.f32 1.0, %v1985_v61 }
 0x21b   : > { %2087 = vrcp.f32 %v1731_v37  ;;  %v1720_v6 = vadd.f32 1.1283791, %v1719_v49  ;;  %v1743_v19 = vand.u32 2147483648, %v1731_v37  ;;  %v1741_v36 = vand.u32 2147483647, %v1731_v37 }
 0x21c   : > { %1793 = vxpose.xlu2.b32.cont [13/16] %v1777_v42, 128  ;;  %v1695_v10 = vmul.f32 %v2086_v45, %v1694_v8  ;;  %v1778_v0 = vmul.f32 %v1762_v22, %v1090_v57  ;;  %vm1737_vm1 = vweird.f32 %v1731_v37 }
 0x21d   : > { %v1744_v59 = vor.u32 1.1754944e-38, %v1743_v19  ;;  %v1721_v28 = vmul.f32 %v1720_v6, %v3435_v17  ;;  %vm1742_vm5 = vcmp.eq.f32.partialorder %v1741_v36, 8.507059e+37 }
 0x21e   : > { %v1696_v53 = vadd.f32 %v2086_v45, %v1695_v10 }
 0x220   : > { %v1700_v63 = vsel %vm1699_vm14, %v2086_v45, %v1696_v53 }
 0x221   : > { %v1705_v4 = vsel %vm1702_vm15, %v1704_v23, %v1700_v63  ;;  %v2088_v48 = vpop.eup %2087 }
 0x222   : > { %v1706_v41 = vmul.f32 %v1705_v4, %v1681_v34  ;;  %v1733_v12 = vmul.f32 %v2088_v48, %v1731_v37  ;;  %vm1738_vm0 = vweird.f32 %v2088_v48 }
 0x223   : > { %vm1739_vm2 = vmor %vm1737_vm1, %vm1738_vm0 }
 0x224   : > { %1794 = vxpose.xlu2.b32.cont [14/16] %v1778_v0, 128  ;;  %v1986_v11 = vclamps-f32 %v1706_v41, 1.0  ;;  %v1734_v30 = vsub.f32 1.0, %v1733_v12 }
 0x226   : > { %v1763_v43 = vadd.f32 1.0, %v1986_v11  ;;  %v1735_v21 = vmul.f32 %v2088_v48, %v1734_v30 }
 0x228   : > { %v1779_v18 = vmul.f32 %v1763_v43, %v1091_v1  ;;  %v1736_v35 = vadd.f32 %v2088_v48, %v1735_v21 }
 0x22a   : > { %v1740_v5 = vsel %vm1739_vm2, %v2088_v48, %v1736_v35 }
 0x22b   : > { %v1745_v62 = vsel %vm1742_vm5, %v1744_v59, %v1740_v5 }
 0x22c   : > { %1795 = vxpose.xlu2.b32.cont [15/16] %v1779_v18, 128  ;;  %v1746_v26 = vmul.f32 %v1745_v62, %v1721_v28 }
 0x22e   : > { %v1987_v16 = vclamps-f32 %v1746_v26, 1.0 }
 0x230   : > { %v1764_v25 = vadd.f32 1.0, %v1987_v16 }
 0x232   : > { %v1780_v51 = vmul.f32 %v1764_v25, %v1092_v54 }
 0x234   : > { %1796 = vxpose.xlu2.b32.end [16/16] %v1780_v51, 128 }
 0x255   : > { %v1797_v17 = vpop.trf.xlu2 }
 0x256   : > { %1813 = vst [vmem:[%s3492_s30] sm:$0xff] %v1797_v17 }
 0x25d   : > { %v1798_v15 = vpop.trf.xlu2 }
 0x25e   : > { %1814 = vst [vmem:[%s3492_s30 + $0x8] sm:$0xff] %v1798_v15 }
 0x265   : > { %v1799_v13 = vpop.trf.xlu2 }
 0x266   : > { %1815 = vst [vmem:[%s3492_s30 + $0x10] sm:$0xff] %v1799_v13 }
 0x26d   : > { %v1800_v52 = vpop.trf.xlu2 }
 0x26e   : > { %1816 = vst [vmem:[%s3492_s30 + $0x18] sm:$0xff] %v1800_v52 }
 0x275   : > { %v1801_v38 = vpop.trf.xlu2 }
 0x276   : > { %1817 = vst [vmem:[%s3492_s30 + $0x20] sm:$0xff] %v1801_v38 }
 0x27d   : > { %v1802_v9 = vpop.trf.xlu2 }
 0x27e   : > { %1818 = vst [vmem:[%s3492_s30 + $0x28] sm:$0xff] %v1802_v9 }
 0x285   : > { %v1803_v14 = vpop.trf.xlu2 }
 0x286   : > { %1819 = vst [vmem:[%s3492_s30 + $0x30] sm:$0xff] %v1803_v14 }
 0x28d   : > { %v1804_v40 = vpop.trf.xlu2 }
 0x28e   : > { %1820 = vst [vmem:[%s3492_s30 + $0x38] sm:$0xff] %v1804_v40 }
 0x295   : > { %v1805_v24 = vpop.trf.xlu2 }
 0x296   : > { %1821 = vst [vmem:[%s3492_s30 + $0x40] sm:$0xff] %v1805_v24 }
 0x29d   : > { %v1806_v56 = vpop.trf.xlu2 }
 0x29e   : > { %1822 = vst [vmem:[%s3492_s30 + $0x48] sm:$0xff] %v1806_v56 }
 0x2a5   : > { %v1807_v46 = vpop.trf.xlu2 }
 0x2a6   : > { %1823 = vst [vmem:[%s3492_s30 + $0x50] sm:$0xff] %v1807_v46 }
 0x2ad   : > { %v1808_v3 = vpop.trf.xlu2 }
 0x2ae   : > { %1824 = vst [vmem:[%s3492_s30 + $0x58] sm:$0xff] %v1808_v3 }
 0x2b5   : > { %v1809_v39 = vpop.trf.xlu2 }
 0x2b6   : > { %1825 = vst [vmem:[%s3492_s30 + $0x60] sm:$0xff] %v1809_v39 }
 0x2bd   : > { %v1810_v55 = vpop.trf.xlu2 }
 0x2be   : > { %1826 = vst [vmem:[%s3492_s30 + $0x68] sm:$0xff] %v1810_v55 }
 0x2c5   : > { %v1811_v58 = vpop.trf.xlu2 }
 0x2c6   : > { %1827 = vst [vmem:[%s3492_s30 + $0x70] sm:$0xff] %v1811_v58 }
 0x2cd   : > { %v1812_v44 = vpop.trf.xlu2 }
 0x2ce   : > { %1828 = vst [vmem:[%s3492_s30 + $0x78] sm:$0xff] %v1812_v44 }
 0x2cf PF: > { %s16_s23 = sadd.s32 1, %s2113_s23   ;;  %s3633_s21 = smov %s2109_s22 }
 0x2d0   : > { %p13_p5 = scmp.ge.s32.totalorder %s16_s23, 4   ;;  %s3634_s22 = smov %s3636_s24 }
 0x2d2   :  { %15 = sbr.rel (!%p13_p5) target bundleno = 2 (0x2), region = 78 }

</bundles_post_ra>
